<compile_context>
chip_gen: v7x
topology: tpu7x:2x2x1
jax: 0.10.0
libtpu: 0.0.40
codegen_flags: <defaults>
</compile_context>

<pallas_src>
import math
import jax
import jax.numpy as jnp
from jax.experimental import pallas as pl
from jax.experimental.pallas import tpu as pltpu

filters_mnist = [[16, [4, 4], 2], [32, [4, 4], 2], [256, [8, 8], 1]]


def _round_up(x, m):
    return ((x + m - 1) // m) * m


# ---------------------------- Pallas kernels ---------------------------------

def _conv_gemm_kernel(p_ref, w_ref, b_ref, o_ref):
    """One M-tile of tanh(patches @ W + b): bf16 in, f32 accumulate, bf16 out."""
    acc = jnp.dot(p_ref[...], w_ref[...], preferred_element_type=jnp.float32)
    o_ref[...] = jnp.tanh(acc + b_ref[...]).astype(o_ref.dtype)


def _tail_kernel(x_ref, w3_ref, b3_ref, w4_ref, b4_ref, o_ref):
    """Fused tail: layer-3 full-extent conv (+tanh), final 1x1 conv, log_softmax."""
    h = jnp.dot(x_ref[...], w3_ref[...], preferred_element_type=jnp.float32)
    h = jnp.tanh(h + b3_ref[...])
    logits = jnp.dot(h.astype(w4_ref.dtype), w4_ref[...],
                     preferred_element_type=jnp.float32) + b4_ref[...]
    m = jnp.max(logits, axis=-1, keepdims=True)
    s = logits - m
    lse = jnp.log(jnp.sum(jnp.exp(s), axis=-1, keepdims=True))
    o_ref[...] = s - lse


def _conv_gemm(patches, w2d, bias, tm_max=512):
    """tanh(patches @ w2d + bias), tiled over M rows, parallel grid."""
    M, K = patches.shape
    N = w2d.shape[1]
    # Pick the number of M-blocks first, then the smallest multiple-of-8 tile
    # that covers M with that many blocks (minimizes padded rows).
    nblk = -(-M // tm_max)
    tm = _round_up(-(-M // nblk), 8)
    Mp = tm * nblk
    if Mp != M:
        patches = jnp.pad(patches, ((0, Mp - M), (0, 0)))
    out = pl.pallas_call(
        _conv_gemm_kernel,
        out_shape=jax.ShapeDtypeStruct((Mp, N), jnp.bfloat16),
        grid=(nblk,),
        in_specs=[pl.BlockSpec((tm, K), lambda i: (i, 0)),
                  pl.BlockSpec((K, N), lambda i: (0, 0)),
                  pl.BlockSpec((1, N), lambda i: (0, 0))],
        out_specs=pl.BlockSpec((tm, N), lambda i: (i, 0)),
        compiler_params=pltpu.CompilerParams(dimension_semantics=("parallel",)),
    )(patches, w2d, bias)
    return out[:M] if Mp != M else out


def _tail_fused(x_flat, w3, b3, w4, b4):
    B, K = x_flat.shape
    H3 = w3.shape[1]
    A = w4.shape[1]
    return pl.pallas_call(
        _tail_kernel,
        out_shape=jax.ShapeDtypeStruct((B, A), jnp.float32),
        grid=(1,),
        in_specs=[pl.BlockSpec((B, K), lambda i: (0, 0)),
                  pl.BlockSpec((K, H3), lambda i: (0, 0)),
                  pl.BlockSpec((1, H3), lambda i: (0, 0)),
                  pl.BlockSpec((H3, A), lambda i: (0, 0)),
                  pl.BlockSpec((1, A), lambda i: (0, 0))],
        out_specs=pl.BlockSpec((B, A), lambda i: (0, 0)),
    )(x_flat, w3, b3, w4, b4)


# ------------------------------ JAX glue --------------------------------------

def layer_defs(action_size, in_channels=1):
    """Static (cin, cout, kh, kw, stride, padding, apply_tanh) per layer."""
    defs = []
    ic = in_channels
    for oc, ks, stride in filters_mnist[:-1]:
        padding = math.ceil((ks[0] - 1) / 2)
        defs.append((ic, oc, ks[0], ks[1], stride, padding, True))
        ic = oc
    oc, ks, stride = filters_mnist[-1]
    defs.append((ic, oc, ks[0], ks[1], stride, 0, True))
    ic = oc
    defs.append((ic, action_size, 1, 1, stride, 0, False))
    return defs


def _im2col_nhwc(x, kh, kw, stride, padding):
    """NHWC im2col; patch feature order is (kh, kw, cin)."""
    B, H, W, C = x.shape
    xp = jnp.pad(x, ((0, 0), (padding, padding), (padding, padding), (0, 0)))
    Hp, Wp = H + 2 * padding, W + 2 * padding
    oh = (Hp - kh) // stride + 1
    ow = (Wp - kw) // stride + 1
    slices = [xp[:, i:i + stride * oh:stride, j:j + stride * ow:stride, :]
              for i in range(kh) for j in range(kw)]
    p = jnp.stack(slices, axis=3).reshape(B * oh * ow, kh * kw * C)
    return p, oh, ow


def init_params(key, action_size, in_channels=1):
    """PyTorch-Conv2d-style deterministic init mirroring the module's layers."""
    params = []
    for (cin, cout, kh, kw, stride, padding, tanh) in layer_defs(action_size, in_channels):
        key, k1, k2 = jax.random.split(key, 3)
        fan_in = cin * kh * kw
        bound = 1.0 / math.sqrt(fan_in)
        w = jax.random.uniform(k1, (cout, cin, kh, kw), jnp.float32, -bound, bound)
        b = jax.random.uniform(k2, (cout,), jnp.float32, -bound, bound)
        params.append(dict(w=w, b=b))
    return params


def prepare_params(params):
    """Kernel-ready weights: (kh*kw*cin, cout) bf16 matrices + (1, cout) f32 bias."""
    prepped = []
    for p in params:
        w = p["w"]                                   # (OC, IC, KH, KW)
        oc, ic, kh, kw = w.shape
        w2d = w.transpose(2, 3, 1, 0).reshape(kh * kw * ic, oc).astype(jnp.bfloat16)
        prepped.append((w2d, p["b"].reshape(1, oc).astype(jnp.float32)))
    return prepped


def mnist_convnet_forward(prepped, x_nchw):
    in_channels = x_nchw.shape[1]
    action_size = prepped[-1][0].shape[1]
    defs = layer_defs(action_size, in_channels)

    # single layout change: NCHW -> NHWC; bf16 activations from here on
    x = jnp.transpose(x_nchw, (0, 2, 3, 1)).astype(jnp.bfloat16)
    B = x.shape[0]

    # layers 1-2: im2col + M-tiled Pallas GEMM (+bias+tanh)
    for (w2d, b), (cin, cout, kh, kw, stride, padding, _) in zip(prepped[:2], defs[:2]):
        patches, oh, ow = _im2col_nhwc(x, kh, kw, stride, padding)
        x = _conv_gemm(patches, w2d, b).reshape(B, oh, ow, cout)

    # fused tail: layer-3 conv covers the whole spatial extent, so its im2col is a
    # pure reshape; tanh + final 1x1 conv + log_softmax happen in one Pallas kernel.
    _, _, kh3, kw3, _, pad3, _ = defs[2]
    Bx, Hx, Wx, Cx = x.shape
    if not (kh3 == Hx and kw3 == Wx and pad3 == 0):
        raise ValueError(
            "fused tail requires the layer-3 kernel to cover the full spatial extent; "
            f"got spatial {(Hx, Wx)} vs kernel {(kh3, kw3)} (use 28x28 MNIST input)")
    (w3, b3), (w4, b4) = prepped[2], prepped[3]
    return _tail_fused(x.reshape(Bx, Hx * Wx * Cx), w3, b3, w4, b4)


def mnist_convnet_reference(params, x_nchw):
    """Pure-JAX f32 reference (dense Conv2d semantics) for correctness checking."""
    action_size = params[-1]["w"].shape[0]
    defs = layer_defs(action_size, x_nchw.shape[1])
    h = x_nchw
    for p, (cin, cout, kh, kw, stride, padding, tanh) in zip(params, defs):
        h = jax.lax.conv_general_dilated(
            h, p["w"], window_strides=(stride, stride),
            padding=[(padding, padding), (padding, padding)],
            dimension_numbers=("NCHW", "OIHW", "NCHW"))
        h = h + p["b"].reshape(1, -1, 1, 1)
        if tanh:
            h = jnp.tanh(h)
    logits = h.reshape(h.shape[0], h.shape[1])
    return jax.nn.log_softmax(logits, axis=1)


if __name__ == "__main__":
    key = jax.random.PRNGKey(0)
    kx, kp = jax.random.split(key)

    # MNIST-consistent shapes: batch=2, 1 channel, 28x28 spatial
    # (28x28 is required so the 8x8 conv of layer 3 reduces spatial to 1x1).
    B, C, H, W = 2, 1, 28, 28
    action_size = 10
    directions = 4  # parity with the module signature; functionally unused

    x = jax.random.normal(kx, (B, C, H, W), jnp.float32)
    params = init_params(kp, action_size, in_channels=C)
    prepped = prepare_params(params)

    fwd = jax.jit(mnist_convnet_forward)
    out = jax.block_until_ready(fwd(prepped, x))

    assert out.shape == (B, action_size), out.shape
    # rows of log_softmax exponentiate-sum to ~1
    assert jnp.allclose(jnp.exp(out).sum(axis=1), 1.0, atol=1e-3)
    # matches the pure-JAX f32 reference up to bf16 activation error
    ref = mnist_convnet_reference(params, x)
    assert jnp.allclose(out, ref, atol=5e-2), float(jnp.abs(out - ref).max())
    print("KERNEL_OK")
</pallas_src>

<mosaic_0001>
module attributes {stable_mosaic.version = 11 : i64} {
  func.func @_conv_gemm_kernel(%arg0: i32, %arg1: memref<456x16xbf16, #tpu.memory_space<vmem>>, %arg2: memref<16x16xbf16, #tpu.memory_space<vmem>>, %arg3: memref<1x16xf32, #tpu.memory_space<vmem>>, %arg4: memref<456x16xbf16, #tpu.memory_space<vmem>>) attributes {dimension_semantics = [#tpu.dimension_semantics<parallel>], iteration_bounds = array<i64: 1>, scalar_prefetch = 0 : i64, scratch_operands = 0 : i64, tpu.core_type = #tpu.core_type<tc>, window_params = [{transform_indices = @transform_0, window_bounds = array<i64: 456, 16>}, {pipeline_mode = #tpu.pipeline_mode<synchronous>, transform_indices = @transform_1, window_bounds = array<i64: 16, 16>}, {pipeline_mode = #tpu.pipeline_mode<synchronous>, transform_indices = @transform_2, window_bounds = array<i64: 1, 16>}, {transform_indices = @transform_3, window_bounds = array<i64: 456, 16>}]} {
    %c0 = arith.constant 0 : index
    %c0_0 = arith.constant 0 : index
    %0 = vector.load %arg1[%c0, %c0_0] : memref<456x16xbf16, #tpu.memory_space<vmem>>, vector<456x16xbf16>
    %c0_1 = arith.constant 0 : index
    %c0_2 = arith.constant 0 : index
    %1 = vector.load %arg2[%c0_1, %c0_2] : memref<16x16xbf16, #tpu.memory_space<vmem>>, vector<16x16xbf16>
    %cst = arith.constant dense<0.000000e+00> : vector<456x16xf32>
    %2 = tpu.matmul %0, %1, %cst {dimension_numbers = #tpu.dot_dimension_numbers<[1], [0], [0], [1], [0, 0, 1, 1], [], []>} : vector<456x16xbf16>, vector<16x16xbf16>, vector<456x16xf32> -> vector<456x16xf32>
    %c0_3 = arith.constant 0 : index
    %c0_4 = arith.constant 0 : index
    %3 = vector.load %arg3[%c0_3, %c0_4] : memref<1x16xf32, #tpu.memory_space<vmem>>, vector<1x16xf32>
    %4 = vector.broadcast %3 : vector<1x16xf32> to vector<456x16xf32>
    %5 = arith.addf %2, %4 : vector<456x16xf32>
    %6 = math.tanh %5 : vector<456x16xf32>
    %7 = arith.truncf %6 : vector<456x16xf32> to vector<456x16xbf16>
    %c0_5 = arith.constant 0 : index
    %c0_6 = arith.constant 0 : index
    %8 = vector.load %arg4[%c0_5, %c0_6] : memref<456x16xbf16, #tpu.memory_space<vmem>>, vector<456x16xbf16>
    tpu.vector_store %arg4[%c0_5, %c0_6], %7 {strides = array<i32>} : memref<456x16xbf16, #tpu.memory_space<vmem>>, vector<456x16xbf16>,
    return
  }
  func.func @transform_0(%arg0: i32) -> (i32, i32) {
    %c0_i32 = arith.constant 0 : i32
    %c0_i32_0 = arith.constant 0 : i32
    return %arg0, %c0_i32 : i32, i32
  }
  func.func @transform_1(%arg0: i32) -> (i32, i32) {
    %c0_i32 = arith.constant 0 : i32
    %c0_i32_0 = arith.constant 0 : i32
    %c0_i32_1 = arith.constant 0 : i32
    return %c0_i32, %c0_i32_0 : i32, i32
  }
  func.func @transform_2(%arg0: i32) -> (i32, i32) {
    %c0_i32 = arith.constant 0 : i32
    %c0_i32_0 = arith.constant 0 : i32
    %c0_i32_1 = arith.constant 0 : i32
    return %c0_i32, %c0_i32_0 : i32, i32
  }
  func.func @transform_3(%arg0: i32) -> (i32, i32) {
    %c0_i32 = arith.constant 0 : i32
    %c0_i32_0 = arith.constant 0 : i32
    return %arg0, %c0_i32 : i32, i32
  }
}

module attributes {stable_mosaic.version = 11 : i64} {
  func.func @_conv_gemm_kernel(%arg0: i32, %arg1: memref<128x256xbf16, #tpu.memory_space<vmem>>, %arg2: memref<256x32xbf16, #tpu.memory_space<vmem>>, %arg3: memref<1x32xf32, #tpu.memory_space<vmem>>, %arg4: memref<128x32xbf16, #tpu.memory_space<vmem>>) attributes {dimension_semantics = [#tpu.dimension_semantics<parallel>], iteration_bounds = array<i64: 1>, scalar_prefetch = 0 : i64, scratch_operands = 0 : i64, tpu.core_type = #tpu.core_type<tc>, window_params = [{transform_indices = @transform_0, window_bounds = array<i64: 128, 256>}, {pipeline_mode = #tpu.pipeline_mode<synchronous>, transform_indices = @transform_1, window_bounds = array<i64: 256, 32>}, {pipeline_mode = #tpu.pipeline_mode<synchronous>, transform_indices = @transform_2, window_bounds = array<i64: 1, 32>}, {transform_indices = @transform_3, window_bounds = array<i64: 128, 32>}]} {
    %c0 = arith.constant 0 : index
    %c0_0 = arith.constant 0 : index
    %0 = vector.load %arg1[%c0, %c0_0] : memref<128x256xbf16, #tpu.memory_space<vmem>>, vector<128x256xbf16>
    %c0_1 = arith.constant 0 : index
    %c0_2 = arith.constant 0 : index
    %1 = vector.load %arg2[%c0_1, %c0_2] : memref<256x32xbf16, #tpu.memory_space<vmem>>, vector<256x32xbf16>
    %cst = arith.constant dense<0.000000e+00> : vector<128x32xf32>
    %2 = tpu.matmul %0, %1, %cst {dimension_numbers = #tpu.dot_dimension_numbers<[1], [0], [0], [1], [0, 0, 1, 1], [], []>} : vector<128x256xbf16>, vector<256x32xbf16>, vector<128x32xf32> -> vector<128x32xf32>
    %c0_3 = arith.constant 0 : index
    %c0_4 = arith.constant 0 : index
    %3 = vector.load %arg3[%c0_3, %c0_4] : memref<1x32xf32, #tpu.memory_space<vmem>>, vector<1x32xf32>
    %4 = vector.broadcast %3 : vector<1x32xf32> to vector<128x32xf32>
    %5 = arith.addf %2, %4 : vector<128x32xf32>
    %6 = math.tanh %5 : vector<128x32xf32>
    %7 = arith.truncf %6 : vector<128x32xf32> to vector<128x32xbf16>
    %c0_5 = arith.constant 0 : index
    %c0_6 = arith.constant 0 : index
    %8 = vector.load %arg4[%c0_5, %c0_6] : memref<128x32xbf16, #tpu.memory_space<vmem>>, vector<128x32xbf16>
    tpu.vector_store %arg4[%c0_5, %c0_6], %7 {strides = array<i32>} : memref<128x32xbf16, #tpu.memory_space<vmem>>, vector<128x32xbf16>,
    return
  }
  func.func @transform_0(%arg0: i32) -> (i32, i32) {
    %c0_i32 = arith.constant 0 : i32
    %c0_i32_0 = arith.constant 0 : i32
    return %arg0, %c0_i32 : i32, i32
  }
  func.func @transform_1(%arg0: i32) -> (i32, i32) {
    %c0_i32 = arith.constant 0 : i32
    %c0_i32_0 = arith.constant 0 : i32
    %c0_i32_1 = arith.constant 0 : i32
    return %c0_i32, %c0_i32_0 : i32, i32
  }
  func.func @transform_2(%arg0: i32) -> (i32, i32) {
    %c0_i32 = arith.constant 0 : i32
    %c0_i32_0 = arith.constant 0 : i32
    %c0_i32_1 = arith.constant 0 : i32
    return %c0_i32, %c0_i32_0 : i32, i32
  }
  func.func @transform_3(%arg0: i32) -> (i32, i32) {
    %c0_i32 = arith.constant 0 : i32
    %c0_i32_0 = arith.constant 0 : i32
    return %arg0, %c0_i32 : i32, i32
  }
}

module attributes {stable_mosaic.version = 11 : i64} {
  func.func @_tail_kernel(%arg0: i32, %arg1: memref<2x2048xbf16, #tpu.memory_space<vmem>>, %arg2: memref<2048x256xbf16, #tpu.memory_space<vmem>>, %arg3: memref<1x256xf32, #tpu.memory_space<vmem>>, %arg4: memref<256x10xbf16, #tpu.memory_space<vmem>>, %arg5: memref<1x10xf32, #tpu.memory_space<vmem>>, %arg6: memref<2x10xf32, #tpu.memory_space<vmem>>) attributes {dimension_semantics = [#tpu.dimension_semantics<arbitrary>], iteration_bounds = array<i64: 1>, scalar_prefetch = 0 : i64, scratch_operands = 0 : i64, tpu.core_type = #tpu.core_type<tc>, window_params = [{pipeline_mode = #tpu.pipeline_mode<synchronous>, transform_indices = @transform_0, window_bounds = array<i64: 2, 2048>}, {pipeline_mode = #tpu.pipeline_mode<synchronous>, transform_indices = @transform_1, window_bounds = array<i64: 2048, 256>}, {pipeline_mode = #tpu.pipeline_mode<synchronous>, transform_indices = @transform_2, window_bounds = array<i64: 1, 256>}, {pipeline_mode = #tpu.pipeline_mode<synchronous>, transform_indices = @transform_3, window_bounds = array<i64: 256, 10>}, {pipeline_mode = #tpu.pipeline_mode<synchronous>, transform_indices = @transform_4, window_bounds = array<i64: 1, 10>}, {pipeline_mode = #tpu.pipeline_mode<synchronous>, transform_indices = @transform_5, window_bounds = array<i64: 2, 10>}]} {
    %c0 = arith.constant 0 : index
    %c0_0 = arith.constant 0 : index
    %0 = vector.load %arg1[%c0, %c0_0] : memref<2x2048xbf16, #tpu.memory_space<vmem>>, vector<2x2048xbf16>
    %c0_1 = arith.constant 0 : index
    %c0_2 = arith.constant 0 : index
    %1 = vector.load %arg2[%c0_1, %c0_2] : memref<2048x256xbf16, #tpu.memory_space<vmem>>, vector<2048x256xbf16>
    %cst = arith.constant dense<0.000000e+00> : vector<2x256xf32>
    %2 = tpu.matmul %0, %1, %cst {dimension_numbers = #tpu.dot_dimension_numbers<[1], [0], [0], [1], [0, 0, 1, 1], [], []>} : vector<2x2048xbf16>, vector<2048x256xbf16>, vector<2x256xf32> -> vector<2x256xf32>
    %c0_3 = arith.constant 0 : index
    %c0_4 = arith.constant 0 : index
    %3 = vector.load %arg3[%c0_3, %c0_4] : memref<1x256xf32, #tpu.memory_space<vmem>>, vector<1x256xf32>
    %4 = vector.broadcast %3 : vector<1x256xf32> to vector<2x256xf32>
    %5 = arith.addf %2, %4 : vector<2x256xf32>
    %6 = math.tanh %5 : vector<2x256xf32>
    %7 = arith.truncf %6 : vector<2x256xf32> to vector<2x256xbf16>
    %c0_5 = arith.constant 0 : index
    %c0_6 = arith.constant 0 : index
    %8 = vector.load %arg4[%c0_5, %c0_6] : memref<256x10xbf16, #tpu.memory_space<vmem>>, vector<256x10xbf16>
    %cst_7 = arith.constant dense<0.000000e+00> : vector<2x10xf32>
    %9 = tpu.matmul %7, %8, %cst_7 {dimension_numbers = #tpu.dot_dimension_numbers<[1], [0], [0], [1], [0, 0, 1, 1], [], []>} : vector<2x256xbf16>, vector<256x10xbf16>, vector<2x10xf32> -> vector<2x10xf32>
    %c0_8 = arith.constant 0 : index
    %c0_9 = arith.constant 0 : index
    %10 = vector.load %arg5[%c0_8, %c0_9] : memref<1x10xf32, #tpu.memory_space<vmem>>, vector<1x10xf32>
    %11 = vector.broadcast %10 : vector<1x10xf32> to vector<2x10xf32>
    %12 = arith.addf %9, %11 : vector<2x10xf32>
    %cst_10 = arith.constant dense<0xFF800000> : vector<2xf32>
    %13 = vector.multi_reduction <maximumf>, %12, %cst_10 [1] : vector<2x10xf32> to vector<2xf32>
    %14 = vector.shape_cast %13 : vector<2xf32> to vector<2x1xf32>
    %15 = vector.broadcast %14 : vector<2x1xf32> to vector<2x10xf32>
    %16 = arith.subf %12, %15 : vector<2x10xf32>
    %17 = math.exp %16 : vector<2x10xf32>
    %cst_11 = arith.constant dense<0.000000e+00> : vector<2xf32>
    %18 = vector.multi_reduction <add>, %17, %cst_11 [1] : vector<2x10xf32> to vector<2xf32>
    %19 = vector.shape_cast %18 : vector<2xf32> to vector<2x1xf32>
    %20 = math.log %19 : vector<2x1xf32>
    %21 = vector.broadcast %20 : vector<2x1xf32> to vector<2x10xf32>
    %22 = arith.subf %16, %21 : vector<2x10xf32>
    %c0_12 = arith.constant 0 : index
    %c0_13 = arith.constant 0 : index
    %23 = vector.load %arg6[%c0_12, %c0_13] : memref<2x10xf32, #tpu.memory_space<vmem>>, vector<2x10xf32>
    tpu.vector_store %arg6[%c0_12, %c0_13], %22 {strides = array<i32>} : memref<2x10xf32, #tpu.memory_space<vmem>>, vector<2x10xf32>,
    return
  }
  func.func @transform_0(%arg0: i32) -> (i32, i32) {
    %c0_i32 = arith.constant 0 : i32
    %c0_i32_0 = arith.constant 0 : i32
    %c0_i32_1 = arith.constant 0 : i32
    return %c0_i32, %c0_i32_0 : i32, i32
  }
  func.func @transform_1(%arg0: i32) -> (i32, i32) {
    %c0_i32 = arith.constant 0 : i32
    %c0_i32_0 = arith.constant 0 : i32
    %c0_i32_1 = arith.constant 0 : i32
    return %c0_i32, %c0_i32_0 : i32, i32
  }
  func.func @transform_2(%arg0: i32) -> (i32, i32) {
    %c0_i32 = arith.constant 0 : i32
    %c0_i32_0 = arith.constant 0 : i32
    %c0_i32_1 = arith.constant 0 : i32
    return %c0_i32, %c0_i32_0 : i32, i32
  }
  func.func @transform_3(%arg0: i32) -> (i32, i32) {
    %c0_i32 = arith.constant 0 : i32
    %c0_i32_0 = arith.constant 0 : i32
    %c0_i32_1 = arith.constant 0 : i32
    return %c0_i32, %c0_i32_0 : i32, i32
  }
  func.func @transform_4(%arg0: i32) -> (i32, i32) {
    %c0_i32 = arith.constant 0 : i32
    %c0_i32_0 = arith.constant 0 : i32
    %c0_i32_1 = arith.constant 0 : i32
    return %c0_i32, %c0_i32_0 : i32, i32
  }
  func.func @transform_5(%arg0: i32) -> (i32, i32) {
    %c0_i32 = arith.constant 0 : i32
    %c0_i32_0 = arith.constant 0 : i32
    %c0_i32_1 = arith.constant 0 : i32
    return %c0_i32, %c0_i32_0 : i32, i32
  }
}

</mosaic_0001>

<bundles_post_ra>
// kernel: mnist_convnet_forward.3
= control target key start
LH: loop header
LB: loop body
LE: loop exit
PB: predicated region body
PF: predicated region fallthrough
CT: control target
= control target key end

     0   :  { %v1400_v0 = vmov 0.0   ;;  %vm1401_vm0 = vmmov 0   ;;  %vm230_vm1 = vcmask 130048   ;;  %vm868_vm2 = vcmask 125952   ;;  %s1891_s1 = inlined_call_operand.vmem [shape: bf16[16,16], index: 1, kind: input, shape index: {}]   ;;  %s1892_s0 = inlined_call_operand.vmem [shape: bf16[456,16], index: 0, kind: input, shape index: {}]   ;;  %s1893_s2 = inlined_call_operand.vmem [shape: f32[1,16], index: 2, kind: input, shape index: {}]   ;;  %s1894_s3 = inlined_call_operand.vmem [shape: bf16[456,16], index: 3, kind: output, shape index: {}]  }
   0x1   :  { %1134 = vmatprep.subr.bf16.mxu0 %v1400_v0  ;;  %v1256_v1 = vld [vmem:[%s1891_s1] sm:$0xff]   ;;  %1136 = vmatprep.mubr.msk.bf16.mxu0 %vm1401_vm0, %v1400_v0  ;;  %v1258_v3 = vld [vmem:[%s1892_s0 + $0x78] sm:$0xff]   ;;  %v1259_v4 = vld [vmem:[%s1892_s0 + $0x8] sm:$0xff]  }
   0x2   :  { %v1257_v2 = vld [vmem:[%s1892_s0] sm:$0xff]   ;;  %1252 = vmatprep.subr.bf16.mxu1 %v1400_v0  ;;  %1196 = vmatprep.mubr.msk.bf16.mxu1 %vm1401_vm0, %v1400_v0  ;;  %v1261_v6 = vld [vmem:[%s1892_s0 + $0x10] sm:$0xff]   ;;  %v1262_v7 = vld [vmem:[%s1892_s0 + $0x88] sm:$0xff]  }
   0x3   :  { %1135 = vmatpush3.bf16.msra.mxu0 %v1256_v1  ;;  %1253 = vmatpush3.bf16.msra.mxu1 %v1256_v1  ;;  %v1260_v5 = vld [vmem:[%s1892_s0 + $0x80] sm:$0xff]   ;;  %v1263_v8 = vld [vmem:[%s1892_s0 + $0x18] sm:$0xff]   ;;  %v1264_v9 = vld [vmem:[%s1892_s0 + $0x90] sm:$0xff]  }
   0x4   :  { %v1265_v10 = vld [vmem:[%s1892_s0 + $0x20] sm:$0xff]   ;;  %v1266_v11 = vld [vmem:[%s1892_s0 + $0x98] sm:$0xff]   ;;  %v1267_v12 = vld [vmem:[%s1892_s0 + $0x28] sm:$0xff]  }
   0x5   :  { %v1268_v13 = vld [vmem:[%s1892_s0 + $0xa0] sm:$0xff]   ;;  %v1269_v14 = vld [vmem:[%s1892_s0 + $0x30] sm:$0xff]   ;;  %v1270_v15 = vld [vmem:[%s1892_s0 + $0xa8] sm:$0xff]  }
   0x6   :  { %1137 = vmatmul.mubr.msk.bf16.vlgmr.msra.gmra.mrb[0].mxu0 %vm230_vm1, %v1257_v2  ;;  %1197 = vmatmul.mubr.msk.bf16.vlgmr.msra.gmra.mrb[0].mxu1 %vm230_vm1, %v1258_v3  ;;  %v1271_v16 = vld [vmem:[%s1892_s0 + $0x38] sm:$0xff]   ;;  %v1272_v17 = vld [vmem:[%s1892_s0 + $0xb0] sm:$0xff]   ;;  %v1273_v18 = vld [vmem:[%s1892_s0 + $0x40] sm:$0xff]  }
   0x7   :  { %1140 = vmatprep.mubr.msk.bf16.mxu0 %vm1401_vm0, %v1400_v0  ;;  %1200 = vmatprep.mubr.msk.bf16.mxu1 %vm1401_vm0, %v1400_v0  ;;  %v1274_v19 = vld [vmem:[%s1892_s0 + $0xb8] sm:$0xff]   ;;  %v1275_v20 = vld [vmem:[%s1892_s0 + $0x48] sm:$0xff]   ;;  %v1276_v21 = vld [vmem:[%s1892_s0 + $0xc0] sm:$0xff]  }
   0x8   :  { %v1277_v22 = vld [vmem:[%s1892_s0 + $0x50] sm:$0xff]   ;;  %v1278_v23 = vld [vmem:[%s1892_s0 + $0xc8] sm:$0xff]   ;;  %v1279_v24 = vld [vmem:[%s1892_s0 + $0x58] sm:$0xff]  }
   0x9   :  { %v1280_v25 = vld [vmem:[%s1892_s0 + $0xd0] sm:$0xff]   ;;  %v1281_v26 = vld [vmem:[%s1892_s0 + $0x60] sm:$0xff]   ;;  %v1282_v27 = vld [vmem:[%s1892_s0 + $0xd8] sm:$0xff]  }
   0xa   :  { %v1283_v28 = vld [vmem:[%s1892_s0 + $0x68] sm:$0xff]   ;;  %v1284_v29 = vld [vmem:[%s1892_s0 + $0xe0] ss:$0 sps:$4 sm:$0xff]   ;;  %v1285_v30 = vld [vmem:[%s1892_s0 + $0x70] sm:$0xff]  }
   0xb   :  { %v1604_v31 = vld [vmem:[%s1893_s2] ss:$0 sm:$0xff] }
   0xe   :  { %1141 = vmatmul.mubr.msk.bf16.gmra.mrb[4].mxu0 %vm230_vm1, %v1259_v4  ;;  %1201 = vmatmul.mubr.msk.bf16.gmra.mrb[4].mxu1 %vm230_vm1, %v1260_v5 }
   0xf   :  { %1144 = vmatprep.mubr.msk.bf16.mxu0 %vm1401_vm0, %v1400_v0  ;;  %1204 = vmatprep.mubr.msk.bf16.mxu1 %vm1401_vm0, %v1400_v0 }
  0x16   :  { %1145 = vmatmul.mubr.msk.bf16.gmra.mrb[8].mxu0 %vm230_vm1, %v1261_v6  ;;  %1205 = vmatmul.mubr.msk.bf16.gmra.mrb[8].mxu1 %vm230_vm1, %v1262_v7 }
  0x17   :  { %1148 = vmatprep.mubr.msk.bf16.mxu0 %vm1401_vm0, %v1400_v0  ;;  %1208 = vmatprep.mubr.msk.bf16.mxu1 %vm1401_vm0, %v1400_v0 }
  0x1e   :  { %1149 = vmatmul.mubr.msk.bf16.gmra.mrb[12].mxu0 %vm230_vm1, %v1263_v8  ;;  %1209 = vmatmul.mubr.msk.bf16.gmra.mrb[12].mxu1 %vm230_vm1, %v1264_v9 }
  0x1f   :  { %1152 = vmatprep.mubr.msk.bf16.mxu0 %vm1401_vm0, %v1400_v0  ;;  %1212 = vmatprep.mubr.msk.bf16.mxu1 %vm1401_vm0, %v1400_v0 }
  0x26   :  { %1153 = vmatmul.mubr.msk.bf16.gmra.mrb[16].mxu0 %vm230_vm1, %v1265_v10  ;;  %1213 = vmatmul.mubr.msk.bf16.gmra.mrb[16].mxu1 %vm230_vm1, %v1266_v11 }
  0x27   :  { %1156 = vmatprep.mubr.msk.bf16.mxu0 %vm1401_vm0, %v1400_v0  ;;  %1216 = vmatprep.mubr.msk.bf16.mxu1 %vm1401_vm0, %v1400_v0 }
  0x2e   :  { %1157 = vmatmul.mubr.msk.bf16.gmra.mrb[20].mxu0 %vm230_vm1, %v1267_v12  ;;  %1217 = vmatmul.mubr.msk.bf16.gmra.mrb[20].mxu1 %vm230_vm1, %v1268_v13 }
  0x2f   :  { %1160 = vmatprep.mubr.msk.bf16.mxu0 %vm1401_vm0, %v1400_v0  ;;  %1220 = vmatprep.mubr.msk.bf16.mxu1 %vm1401_vm0, %v1400_v0 }
  0x36   :  { %1161 = vmatmul.mubr.msk.bf16.gmra.mrb[24].mxu0 %vm230_vm1, %v1269_v14  ;;  %1221 = vmatmul.mubr.msk.bf16.gmra.mrb[24].mxu1 %vm230_vm1, %v1270_v15 }
  0x37   :  { %1164 = vmatprep.mubr.msk.bf16.mxu0 %vm1401_vm0, %v1400_v0  ;;  %1224 = vmatprep.mubr.msk.bf16.mxu1 %vm1401_vm0, %v1400_v0 }
  0x3e   :  { %1165 = vmatmul.mubr.msk.bf16.gmra.mrb[28].mxu0 %vm230_vm1, %v1271_v16  ;;  %1225 = vmatmul.mubr.msk.bf16.gmra.mrb[28].mxu1 %vm230_vm1, %v1272_v17 }
  0x3f   :  { %1168 = vmatprep.mubr.msk.bf16.mxu0 %vm1401_vm0, %v1400_v0  ;;  %1228 = vmatprep.mubr.msk.bf16.mxu1 %vm1401_vm0, %v1400_v0 }
  0x46   :  { %1169 = vmatmul.mubr.msk.bf16.gmra.mrb[32].mxu0 %vm230_vm1, %v1273_v18  ;;  %1229 = vmatmul.mubr.msk.bf16.gmra.mrb[32].mxu1 %vm230_vm1, %v1274_v19 }
  0x47   :  { %1172 = vmatprep.mubr.msk.bf16.mxu0 %vm1401_vm0, %v1400_v0  ;;  %1232 = vmatprep.mubr.msk.bf16.mxu1 %vm1401_vm0, %v1400_v0 }
  0x4e   :  { %1173 = vmatmul.mubr.msk.bf16.gmra.mrb[36].mxu0 %vm230_vm1, %v1275_v20  ;;  %1233 = vmatmul.mubr.msk.bf16.gmra.mrb[36].mxu1 %vm230_vm1, %v1276_v21 }
  0x4f   :  { %1176 = vmatprep.mubr.msk.bf16.mxu0 %vm1401_vm0, %v1400_v0  ;;  %1236 = vmatprep.mubr.msk.bf16.mxu1 %vm1401_vm0, %v1400_v0 }
  0x56   :  { %1177 = vmatmul.mubr.msk.bf16.gmra.mrb[40].mxu0 %vm230_vm1, %v1277_v22  ;;  %1237 = vmatmul.mubr.msk.bf16.gmra.mrb[40].mxu1 %vm230_vm1, %v1278_v23 }
  0x57   :  { %1180 = vmatprep.mubr.msk.bf16.mxu0 %vm1401_vm0, %v1400_v0  ;;  %1240 = vmatprep.mubr.msk.bf16.mxu1 %vm1401_vm0, %v1400_v0 }
  0x5e   :  { %1181 = vmatmul.mubr.msk.bf16.gmra.mrb[44].mxu0 %vm230_vm1, %v1279_v24  ;;  %1241 = vmatmul.mubr.msk.bf16.gmra.mrb[44].mxu1 %vm230_vm1, %v1280_v25 }
  0x5f   :  { %1184 = vmatprep.mubr.msk.bf16.mxu0 %vm1401_vm0, %v1400_v0  ;;  %1244 = vmatprep.mubr.msk.bf16.mxu1 %vm1401_vm0, %v1400_v0 }
  0x66   :  { %1185 = vmatmul.mubr.msk.bf16.gmra.mrb[48].mxu0 %vm230_vm1, %v1281_v26  ;;  %1245 = vmatmul.mubr.msk.bf16.gmra.mrb[48].mxu1 %vm230_vm1, %v1282_v27 }
  0x67   :  { %1188 = vmatprep.mubr.msk.bf16.mxu0 %vm1401_vm0, %v1400_v0  ;;  %1248 = vmatprep.mubr.msk.bf16.mxu1 %vm1401_vm0, %v1400_v0 }
  0x6e   :  { %1189 = vmatmul.mubr.msk.bf16.gmra.mrb[52].mxu0 %vm230_vm1, %v1283_v28  ;;  %1249 = vmatmul.mubr.msk.bf16.gmra.mrb[52].mxu1 %vm230_vm1, %v1284_v29 }
  0x6f   :  { %1192 = vmatprep.mubr.msk.bf16.mxu0 %vm1401_vm0, %v1400_v0 }
  0x76   :  { %1193 = vmatmul.mubr.msk.bf16.gmra.mrb[56].mxu0 %vm230_vm1, %v1285_v30 }
  0xd9   :  { %v352_v32 = vpop.f32.mrb[0].mxu0  ;;  %v472_v33 = vpop.f32.mrb[0].mxu1 }
  0xda   :  { %v353_v34 = vadd.f32 %v1604_v31, %v352_v32  ;;  %v1138_v35 = vpop.f32.mrb[1].mxu0  ;;  %v473_v36 = vadd.f32 %v1604_v31, %v472_v33  ;;  %v1198_v37 = vpop.f32.mrb[1].mxu1 }
  0xdb   :  { %v355_v38 = vpop.f32.mrb[2].mxu0  ;;  %v475_v39 = vpop.f32.mrb[2].mxu1 }
  0xdc   :  { %1286 = vtanh.f32 %v353_v34  ;;  %v356_v40 = vadd.f32 %v1604_v31, %v355_v38  ;;  %v1139_v41 = vpop.f32.mrb[3].mxu0  ;;  %v476_v42 = vadd.f32 %v1604_v31, %v475_v39  ;;  %v1199_v43 = vpop.f32.mrb[3].mxu1 }
  0xdd   :  { %1288 = vtanh.f32 %v473_v36 }
  0xde   :  { %1290 = vtanh.f32 %v356_v40 }
  0xdf   :  { %1292 = vtanh.f32 %v476_v42 }
  0xe1   :  { %v360_v44 = vpop.f32.mrb[4].mxu0  ;;  %v480_v45 = vpop.f32.mrb[4].mxu1 }
  0xe2   :  { %v361_v46 = vadd.f32 %v1604_v31, %v360_v44  ;;  %v1142_v47 = vpop.f32.mrb[5].mxu0  ;;  %v481_v48 = vadd.f32 %v1604_v31, %v480_v45  ;;  %v1202_v49 = vpop.f32.mrb[5].mxu1 }
  0xe3   :  { %v363_v50 = vpop.f32.mrb[6].mxu0  ;;  %v483_v51 = vpop.f32.mrb[6].mxu1 }
  0xe4   :  { %1294 = vtanh.f32 %v361_v46  ;;  %v364_v52 = vadd.f32 %v1604_v31, %v363_v50  ;;  %v1143_v53 = vpop.f32.mrb[7].mxu0  ;;  %v484_v54 = vadd.f32 %v1604_v31, %v483_v51  ;;  %v1203_v55 = vpop.f32.mrb[7].mxu1 }
  0xe5   :  { %1296 = vtanh.f32 %v481_v48 }
  0xe6   :  { %v1287_v56 = vpop.eup %1286  ;;  %1298 = vtanh.f32 %v364_v52 }
  0xe7   :  { %v1289_v57 = vpop.eup %1288  ;;  %v1047_v58 = vpack.c.bf16 %v1287_v56, %v1287_v56  ;;  %1300 = vtanh.f32 %v484_v54 }
  0xe8   :  { %v1291_v59 = vpop.eup %1290  ;;  %v1077_v60 = vpack.c.bf16 %v1289_v57, %v1289_v57 }
  0xe9   :  { %v1293_v61 = vpop.eup %1292  ;;  %869 = vst.msk [vmem:[%s1894_s3] sm:$0xf] %vm868_vm2, %v1047_v58  ;;  %v1048_v62 = vpack.c.bf16 %v1291_v59, %v1291_v59  ;;  %v368_v63 = vpop.f32.mrb[8].mxu0 }
  0xea   :  { %v488_v0 = vpop.f32.mrb[8].mxu1  ;;  %899 = vst.msk [vmem:[%s1894_s3 + $0x78] sm:$0xf] %vm868_vm2, %v1077_v60  ;;  %v1078_v1 = vpack.c.bf16 %v1293_v61, %v1293_v61  ;;  %v369_v2 = vadd.f32 %v1604_v31, %v368_v63  ;;  %v1146_v3 = vpop.f32.mrb[9].mxu0 }
  0xeb   :  { %v489_v4 = vadd.f32 %v1604_v31, %v488_v0  ;;  %v1206_v5 = vpop.f32.mrb[9].mxu1  ;;  %870 = vst.msk [vmem:[%s1894_s3 + $0x4] sm:$0xf] %vm868_vm2, %v1048_v62  ;;  %v371_v6 = vpop.f32.mrb[10].mxu0 }
  0xec   :  { %v491_v7 = vpop.f32.mrb[10].mxu1  ;;  %900 = vst.msk [vmem:[%s1894_s3 + $0x7c] sm:$0xf] %vm868_vm2, %v1078_v1  ;;  %1302 = vtanh.f32 %v369_v2  ;;  %v372_v8 = vadd.f32 %v1604_v31, %v371_v6  ;;  %v1147_v9 = vpop.f32.mrb[11].mxu0 }
  0xed   :  { %v492_v10 = vadd.f32 %v1604_v31, %v491_v7  ;;  %v1207_v11 = vpop.f32.mrb[11].mxu1  ;;  %1304 = vtanh.f32 %v489_v4 }
  0xee   :  { %v1295_v12 = vpop.eup %1294  ;;  %1306 = vtanh.f32 %v372_v8 }
  0xef   :  { %v1297_v13 = vpop.eup %1296  ;;  %v1049_v14 = vpack.c.bf16 %v1295_v12, %v1295_v12  ;;  %1308 = vtanh.f32 %v492_v10 }
  0xf0   :  { %v1299_v15 = vpop.eup %1298  ;;  %v1079_v16 = vpack.c.bf16 %v1297_v13, %v1297_v13 }
  0xf1   :  { %v1301_v17 = vpop.eup %1300  ;;  %871 = vst.msk [vmem:[%s1894_s3 + $0x8] sm:$0xf] %vm868_vm2, %v1049_v14  ;;  %v1050_v18 = vpack.c.bf16 %v1299_v15, %v1299_v15  ;;  %v376_v19 = vpop.f32.mrb[12].mxu0 }
  0xf2   :  { %v496_v20 = vpop.f32.mrb[12].mxu1  ;;  %901 = vst.msk [vmem:[%s1894_s3 + $0x80] sm:$0xf] %vm868_vm2, %v1079_v16  ;;  %v1080_v21 = vpack.c.bf16 %v1301_v17, %v1301_v17  ;;  %v377_v22 = vadd.f32 %v1604_v31, %v376_v19  ;;  %v1150_v23 = vpop.f32.mrb[13].mxu0 }
  0xf3   :  { %v497_v24 = vadd.f32 %v1604_v31, %v496_v20  ;;  %v1210_v25 = vpop.f32.mrb[13].mxu1  ;;  %872 = vst.msk [vmem:[%s1894_s3 + $0xc] sm:$0xf] %vm868_vm2, %v1050_v18  ;;  %v379_v26 = vpop.f32.mrb[14].mxu0 }
  0xf4   :  { %v499_v27 = vpop.f32.mrb[14].mxu1  ;;  %902 = vst.msk [vmem:[%s1894_s3 + $0x84] sm:$0xf] %vm868_vm2, %v1080_v21  ;;  %1310 = vtanh.f32 %v377_v22  ;;  %v380_v28 = vadd.f32 %v1604_v31, %v379_v26  ;;  %v1151_v29 = vpop.f32.mrb[15].mxu0 }
  0xf5   :  { %v500_v30 = vadd.f32 %v1604_v31, %v499_v27  ;;  %v1211_v32 = vpop.f32.mrb[15].mxu1  ;;  %1312 = vtanh.f32 %v497_v24 }
  0xf6   :  { %v1303_v33 = vpop.eup %1302  ;;  %1314 = vtanh.f32 %v380_v28 }
  0xf7   :  { %v1305_v34 = vpop.eup %1304  ;;  %v1051_v35 = vpack.c.bf16 %v1303_v33, %v1303_v33  ;;  %1316 = vtanh.f32 %v500_v30 }
  0xf8   :  { %v1307_v36 = vpop.eup %1306  ;;  %v1081_v37 = vpack.c.bf16 %v1305_v34, %v1305_v34 }
  0xf9   :  { %v1309_v38 = vpop.eup %1308  ;;  %873 = vst.msk [vmem:[%s1894_s3 + $0x10] sm:$0xf] %vm868_vm2, %v1051_v35  ;;  %v1052_v39 = vpack.c.bf16 %v1307_v36, %v1307_v36  ;;  %v384_v40 = vpop.f32.mrb[16].mxu0 }
  0xfa   :  { %v504_v41 = vpop.f32.mrb[16].mxu1  ;;  %903 = vst.msk [vmem:[%s1894_s3 + $0x88] sm:$0xf] %vm868_vm2, %v1081_v37  ;;  %v1082_v42 = vpack.c.bf16 %v1309_v38, %v1309_v38  ;;  %v385_v43 = vadd.f32 %v1604_v31, %v384_v40  ;;  %v1154_v44 = vpop.f32.mrb[17].mxu0 }
  0xfb   :  { %v505_v45 = vadd.f32 %v1604_v31, %v504_v41  ;;  %v1214_v46 = vpop.f32.mrb[17].mxu1  ;;  %874 = vst.msk [vmem:[%s1894_s3 + $0x14] sm:$0xf] %vm868_vm2, %v1052_v39  ;;  %v387_v47 = vpop.f32.mrb[18].mxu0 }
  0xfc   :  { %v507_v48 = vpop.f32.mrb[18].mxu1  ;;  %904 = vst.msk [vmem:[%s1894_s3 + $0x8c] sm:$0xf] %vm868_vm2, %v1082_v42  ;;  %1318 = vtanh.f32 %v385_v43  ;;  %v388_v49 = vadd.f32 %v1604_v31, %v387_v47  ;;  %v1155_v50 = vpop.f32.mrb[19].mxu0 }
  0xfd   :  { %v508_v51 = vadd.f32 %v1604_v31, %v507_v48  ;;  %v1215_v52 = vpop.f32.mrb[19].mxu1  ;;  %1320 = vtanh.f32 %v505_v45 }
  0xfe   :  { %v1311_v53 = vpop.eup %1310  ;;  %1322 = vtanh.f32 %v388_v49 }
  0xff   :  { %v1313_v54 = vpop.eup %1312  ;;  %v1053_v55 = vpack.c.bf16 %v1311_v53, %v1311_v53  ;;  %1324 = vtanh.f32 %v508_v51 }
 0x100   :  { %v1315_v56 = vpop.eup %1314  ;;  %v1083_v57 = vpack.c.bf16 %v1313_v54, %v1313_v54 }
 0x101   :  { %v1317_v58 = vpop.eup %1316  ;;  %875 = vst.msk [vmem:[%s1894_s3 + $0x18] sm:$0xf] %vm868_vm2, %v1053_v55  ;;  %v1054_v59 = vpack.c.bf16 %v1315_v56, %v1315_v56  ;;  %v392_v60 = vpop.f32.mrb[20].mxu0 }
 0x102   :  { %v512_v61 = vpop.f32.mrb[20].mxu1  ;;  %905 = vst.msk [vmem:[%s1894_s3 + $0x90] sm:$0xf] %vm868_vm2, %v1083_v57  ;;  %v1084_v62 = vpack.c.bf16 %v1317_v58, %v1317_v58  ;;  %v393_v63 = vadd.f32 %v1604_v31, %v392_v60  ;;  %v1158_v0 = vpop.f32.mrb[21].mxu0 }
 0x103   :  { %v513_v1 = vadd.f32 %v1604_v31, %v512_v61  ;;  %v1218_v2 = vpop.f32.mrb[21].mxu1  ;;  %876 = vst.msk [vmem:[%s1894_s3 + $0x1c] sm:$0xf] %vm868_vm2, %v1054_v59  ;;  %v395_v3 = vpop.f32.mrb[22].mxu0 }
 0x104   :  { %v515_v4 = vpop.f32.mrb[22].mxu1  ;;  %906 = vst.msk [vmem:[%s1894_s3 + $0x94] sm:$0xf] %vm868_vm2, %v1084_v62  ;;  %1326 = vtanh.f32 %v393_v63  ;;  %v396_v5 = vadd.f32 %v1604_v31, %v395_v3  ;;  %v1159_v6 = vpop.f32.mrb[23].mxu0 }
 0x105   :  { %v516_v7 = vadd.f32 %v1604_v31, %v515_v4  ;;  %v1219_v8 = vpop.f32.mrb[23].mxu1  ;;  %1328 = vtanh.f32 %v513_v1 }
 0x106   :  { %v1319_v9 = vpop.eup %1318  ;;  %1330 = vtanh.f32 %v396_v5 }
 0x107   :  { %v1321_v10 = vpop.eup %1320  ;;  %v1055_v11 = vpack.c.bf16 %v1319_v9, %v1319_v9  ;;  %1332 = vtanh.f32 %v516_v7 }
 0x108   :  { %v1323_v12 = vpop.eup %1322  ;;  %v1085_v13 = vpack.c.bf16 %v1321_v10, %v1321_v10 }
 0x109   :  { %v1325_v14 = vpop.eup %1324  ;;  %877 = vst.msk [vmem:[%s1894_s3 + $0x20] sm:$0xf] %vm868_vm2, %v1055_v11  ;;  %v1056_v15 = vpack.c.bf16 %v1323_v12, %v1323_v12  ;;  %v400_v16 = vpop.f32.mrb[24].mxu0 }
 0x10a   :  { %v520_v17 = vpop.f32.mrb[24].mxu1  ;;  %907 = vst.msk [vmem:[%s1894_s3 + $0x98] sm:$0xf] %vm868_vm2, %v1085_v13  ;;  %v1086_v18 = vpack.c.bf16 %v1325_v14, %v1325_v14  ;;  %v401_v19 = vadd.f32 %v1604_v31, %v400_v16  ;;  %v1162_v20 = vpop.f32.mrb[25].mxu0 }
 0x10b   :  { %v521_v21 = vadd.f32 %v1604_v31, %v520_v17  ;;  %v1222_v22 = vpop.f32.mrb[25].mxu1  ;;  %878 = vst.msk [vmem:[%s1894_s3 + $0x24] sm:$0xf] %vm868_vm2, %v1056_v15  ;;  %v403_v23 = vpop.f32.mrb[26].mxu0 }
 0x10c   :  { %v523_v24 = vpop.f32.mrb[26].mxu1  ;;  %908 = vst.msk [vmem:[%s1894_s3 + $0x9c] sm:$0xf] %vm868_vm2, %v1086_v18  ;;  %1334 = vtanh.f32 %v401_v19  ;;  %v404_v25 = vadd.f32 %v1604_v31, %v403_v23  ;;  %v1163_v26 = vpop.f32.mrb[27].mxu0 }
 0x10d   :  { %v524_v27 = vadd.f32 %v1604_v31, %v523_v24  ;;  %v1223_v28 = vpop.f32.mrb[27].mxu1  ;;  %1336 = vtanh.f32 %v521_v21 }
 0x10e   :  { %v1327_v29 = vpop.eup %1326  ;;  %1338 = vtanh.f32 %v404_v25 }
 0x10f   :  { %v1329_v30 = vpop.eup %1328  ;;  %v1057_v32 = vpack.c.bf16 %v1327_v29, %v1327_v29  ;;  %1340 = vtanh.f32 %v524_v27 }
 0x110   :  { %v1331_v33 = vpop.eup %1330  ;;  %v1087_v34 = vpack.c.bf16 %v1329_v30, %v1329_v30 }
 0x111   :  { %v1333_v35 = vpop.eup %1332  ;;  %879 = vst.msk [vmem:[%s1894_s3 + $0x28] sm:$0xf] %vm868_vm2, %v1057_v32  ;;  %v1058_v36 = vpack.c.bf16 %v1331_v33, %v1331_v33  ;;  %v408_v37 = vpop.f32.mrb[28].mxu0 }
 0x112   :  { %v528_v38 = vpop.f32.mrb[28].mxu1  ;;  %909 = vst.msk [vmem:[%s1894_s3 + $0xa0] sm:$0xf] %vm868_vm2, %v1087_v34  ;;  %v1088_v39 = vpack.c.bf16 %v1333_v35, %v1333_v35  ;;  %v409_v40 = vadd.f32 %v1604_v31, %v408_v37  ;;  %v1166_v41 = vpop.f32.mrb[29].mxu0 }
 0x113   :  { %v529_v42 = vadd.f32 %v1604_v31, %v528_v38  ;;  %v1226_v43 = vpop.f32.mrb[29].mxu1  ;;  %880 = vst.msk [vmem:[%s1894_s3 + $0x2c] sm:$0xf] %vm868_vm2, %v1058_v36  ;;  %v411_v44 = vpop.f32.mrb[30].mxu0 }
 0x114   :  { %v531_v45 = vpop.f32.mrb[30].mxu1  ;;  %910 = vst.msk [vmem:[%s1894_s3 + $0xa4] sm:$0xf] %vm868_vm2, %v1088_v39  ;;  %1342 = vtanh.f32 %v409_v40  ;;  %v412_v46 = vadd.f32 %v1604_v31, %v411_v44  ;;  %v1167_v47 = vpop.f32.mrb[31].mxu0 }
 0x115   :  { %v532_v48 = vadd.f32 %v1604_v31, %v531_v45  ;;  %v1227_v49 = vpop.f32.mrb[31].mxu1  ;;  %1344 = vtanh.f32 %v529_v42 }
 0x116   :  { %v1335_v50 = vpop.eup %1334  ;;  %1346 = vtanh.f32 %v412_v46 }
 0x117   :  { %v1337_v51 = vpop.eup %1336  ;;  %v1059_v52 = vpack.c.bf16 %v1335_v50, %v1335_v50  ;;  %1348 = vtanh.f32 %v532_v48 }
 0x118   :  { %v1339_v53 = vpop.eup %1338  ;;  %v1089_v54 = vpack.c.bf16 %v1337_v51, %v1337_v51 }
 0x119   :  { %v1341_v55 = vpop.eup %1340  ;;  %881 = vst.msk [vmem:[%s1894_s3 + $0x30] sm:$0xf] %vm868_vm2, %v1059_v52  ;;  %v1060_v56 = vpack.c.bf16 %v1339_v53, %v1339_v53  ;;  %v416_v57 = vpop.f32.mrb[32].mxu0 }
 0x11a   :  { %v536_v58 = vpop.f32.mrb[32].mxu1  ;;  %911 = vst.msk [vmem:[%s1894_s3 + $0xa8] sm:$0xf] %vm868_vm2, %v1089_v54  ;;  %v1090_v59 = vpack.c.bf16 %v1341_v55, %v1341_v55  ;;  %v417_v60 = vadd.f32 %v1604_v31, %v416_v57  ;;  %v1170_v61 = vpop.f32.mrb[33].mxu0 }
 0x11b   :  { %v537_v62 = vadd.f32 %v1604_v31, %v536_v58  ;;  %v1230_v63 = vpop.f32.mrb[33].mxu1  ;;  %882 = vst.msk [vmem:[%s1894_s3 + $0x34] sm:$0xf] %vm868_vm2, %v1060_v56  ;;  %v419_v0 = vpop.f32.mrb[34].mxu0 }
 0x11c   :  { %v539_v1 = vpop.f32.mrb[34].mxu1  ;;  %912 = vst.msk [vmem:[%s1894_s3 + $0xac] sm:$0xf] %vm868_vm2, %v1090_v59  ;;  %1350 = vtanh.f32 %v417_v60  ;;  %v420_v2 = vadd.f32 %v1604_v31, %v419_v0  ;;  %v1171_v3 = vpop.f32.mrb[35].mxu0 }
 0x11d   :  { %v540_v4 = vadd.f32 %v1604_v31, %v539_v1  ;;  %v1231_v5 = vpop.f32.mrb[35].mxu1  ;;  %1352 = vtanh.f32 %v537_v62 }
 0x11e   :  { %v1343_v6 = vpop.eup %1342  ;;  %1354 = vtanh.f32 %v420_v2 }
 0x11f   :  { %v1345_v7 = vpop.eup %1344  ;;  %v1061_v8 = vpack.c.bf16 %v1343_v6, %v1343_v6  ;;  %1356 = vtanh.f32 %v540_v4 }
 0x120   :  { %v1347_v9 = vpop.eup %1346  ;;  %v1091_v10 = vpack.c.bf16 %v1345_v7, %v1345_v7 }
 0x121   :  { %v1349_v11 = vpop.eup %1348  ;;  %883 = vst.msk [vmem:[%s1894_s3 + $0x38] sm:$0xf] %vm868_vm2, %v1061_v8  ;;  %v1062_v12 = vpack.c.bf16 %v1347_v9, %v1347_v9  ;;  %v424_v13 = vpop.f32.mrb[36].mxu0 }
 0x122   :  { %v544_v14 = vpop.f32.mrb[36].mxu1  ;;  %913 = vst.msk [vmem:[%s1894_s3 + $0xb0] sm:$0xf] %vm868_vm2, %v1091_v10  ;;  %v1092_v15 = vpack.c.bf16 %v1349_v11, %v1349_v11  ;;  %v425_v16 = vadd.f32 %v1604_v31, %v424_v13  ;;  %v1174_v17 = vpop.f32.mrb[37].mxu0 }
 0x123   :  { %v545_v18 = vadd.f32 %v1604_v31, %v544_v14  ;;  %v1234_v19 = vpop.f32.mrb[37].mxu1  ;;  %884 = vst.msk [vmem:[%s1894_s3 + $0x3c] sm:$0xf] %vm868_vm2, %v1062_v12  ;;  %v427_v20 = vpop.f32.mrb[38].mxu0 }
 0x124   :  { %v547_v21 = vpop.f32.mrb[38].mxu1  ;;  %914 = vst.msk [vmem:[%s1894_s3 + $0xb4] sm:$0xf] %vm868_vm2, %v1092_v15  ;;  %1358 = vtanh.f32 %v425_v16  ;;  %v428_v22 = vadd.f32 %v1604_v31, %v427_v20  ;;  %v1175_v23 = vpop.f32.mrb[39].mxu0 }
 0x125   :  { %v548_v24 = vadd.f32 %v1604_v31, %v547_v21  ;;  %v1235_v25 = vpop.f32.mrb[39].mxu1  ;;  %1360 = vtanh.f32 %v545_v18 }
 0x126   :  { %v1351_v26 = vpop.eup %1350  ;;  %1362 = vtanh.f32 %v428_v22 }
 0x127   :  { %v1353_v27 = vpop.eup %1352  ;;  %v1063_v28 = vpack.c.bf16 %v1351_v26, %v1351_v26  ;;  %1364 = vtanh.f32 %v548_v24 }
 0x128   :  { %v1355_v29 = vpop.eup %1354  ;;  %v1093_v30 = vpack.c.bf16 %v1353_v27, %v1353_v27 }
 0x129   :  { %v1357_v32 = vpop.eup %1356  ;;  %885 = vst.msk [vmem:[%s1894_s3 + $0x40] sm:$0xf] %vm868_vm2, %v1063_v28  ;;  %v1064_v33 = vpack.c.bf16 %v1355_v29, %v1355_v29  ;;  %v432_v34 = vpop.f32.mrb[40].mxu0 }
 0x12a   :  { %v552_v35 = vpop.f32.mrb[40].mxu1  ;;  %915 = vst.msk [vmem:[%s1894_s3 + $0xb8] sm:$0xf] %vm868_vm2, %v1093_v30  ;;  %v1094_v36 = vpack.c.bf16 %v1357_v32, %v1357_v32  ;;  %v433_v37 = vadd.f32 %v1604_v31, %v432_v34  ;;  %v1178_v38 = vpop.f32.mrb[41].mxu0 }
 0x12b   :  { %v553_v39 = vadd.f32 %v1604_v31, %v552_v35  ;;  %v1238_v40 = vpop.f32.mrb[41].mxu1  ;;  %886 = vst.msk [vmem:[%s1894_s3 + $0x44] sm:$0xf] %vm868_vm2, %v1064_v33  ;;  %v435_v41 = vpop.f32.mrb[42].mxu0 }
 0x12c   :  { %v555_v42 = vpop.f32.mrb[42].mxu1  ;;  %916 = vst.msk [vmem:[%s1894_s3 + $0xbc] sm:$0xf] %vm868_vm2, %v1094_v36  ;;  %1366 = vtanh.f32 %v433_v37  ;;  %v436_v43 = vadd.f32 %v1604_v31, %v435_v41  ;;  %v1179_v44 = vpop.f32.mrb[43].mxu0 }
 0x12d   :  { %v556_v45 = vadd.f32 %v1604_v31, %v555_v42  ;;  %v1239_v46 = vpop.f32.mrb[43].mxu1  ;;  %1368 = vtanh.f32 %v553_v39 }
 0x12e   :  { %v1359_v47 = vpop.eup %1358  ;;  %1370 = vtanh.f32 %v436_v43 }
 0x12f   :  { %v1361_v48 = vpop.eup %1360  ;;  %v1065_v49 = vpack.c.bf16 %v1359_v47, %v1359_v47  ;;  %1372 = vtanh.f32 %v556_v45 }
 0x130   :  { %v1363_v50 = vpop.eup %1362  ;;  %v1095_v51 = vpack.c.bf16 %v1361_v48, %v1361_v48 }
 0x131   :  { %v1365_v52 = vpop.eup %1364  ;;  %887 = vst.msk [vmem:[%s1894_s3 + $0x48] sm:$0xf] %vm868_vm2, %v1065_v49  ;;  %v1066_v53 = vpack.c.bf16 %v1363_v50, %v1363_v50  ;;  %v440_v54 = vpop.f32.mrb[44].mxu0 }
 0x132   :  { %v560_v55 = vpop.f32.mrb[44].mxu1  ;;  %917 = vst.msk [vmem:[%s1894_s3 + $0xc0] sm:$0xf] %vm868_vm2, %v1095_v51  ;;  %v1096_v56 = vpack.c.bf16 %v1365_v52, %v1365_v52  ;;  %v441_v57 = vadd.f32 %v1604_v31, %v440_v54  ;;  %v1182_v58 = vpop.f32.mrb[45].mxu0 }
 0x133   :  { %v561_v59 = vadd.f32 %v1604_v31, %v560_v55  ;;  %v1242_v60 = vpop.f32.mrb[45].mxu1  ;;  %888 = vst.msk [vmem:[%s1894_s3 + $0x4c] sm:$0xf] %vm868_vm2, %v1066_v53  ;;  %v443_v61 = vpop.f32.mrb[46].mxu0 }
 0x134   :  { %v563_v62 = vpop.f32.mrb[46].mxu1  ;;  %918 = vst.msk [vmem:[%s1894_s3 + $0xc4] sm:$0xf] %vm868_vm2, %v1096_v56  ;;  %1374 = vtanh.f32 %v441_v57  ;;  %v444_v63 = vadd.f32 %v1604_v31, %v443_v61  ;;  %v1183_v0 = vpop.f32.mrb[47].mxu0 }
 0x135   :  { %v564_v1 = vadd.f32 %v1604_v31, %v563_v62  ;;  %v1243_v2 = vpop.f32.mrb[47].mxu1  ;;  %1376 = vtanh.f32 %v561_v59 }
 0x136   :  { %v1367_v3 = vpop.eup %1366  ;;  %1378 = vtanh.f32 %v444_v63 }
 0x137   :  { %v1369_v4 = vpop.eup %1368  ;;  %v1067_v5 = vpack.c.bf16 %v1367_v3, %v1367_v3  ;;  %1380 = vtanh.f32 %v564_v1 }
 0x138   :  { %v1371_v6 = vpop.eup %1370  ;;  %v1097_v7 = vpack.c.bf16 %v1369_v4, %v1369_v4 }
 0x139   :  { %v1373_v8 = vpop.eup %1372  ;;  %889 = vst.msk [vmem:[%s1894_s3 + $0x50] sm:$0xf] %vm868_vm2, %v1067_v5  ;;  %v1068_v9 = vpack.c.bf16 %v1371_v6, %v1371_v6  ;;  %v448_v10 = vpop.f32.mrb[48].mxu0 }
 0x13a   :  { %v568_v11 = vpop.f32.mrb[48].mxu1  ;;  %919 = vst.msk [vmem:[%s1894_s3 + $0xc8] sm:$0xf] %vm868_vm2, %v1097_v7  ;;  %v1098_v12 = vpack.c.bf16 %v1373_v8, %v1373_v8  ;;  %v449_v13 = vadd.f32 %v1604_v31, %v448_v10  ;;  %v1186_v14 = vpop.f32.mrb[49].mxu0 }
 0x13b   :  { %v569_v15 = vadd.f32 %v1604_v31, %v568_v11  ;;  %v1246_v16 = vpop.f32.mrb[49].mxu1  ;;  %890 = vst.msk [vmem:[%s1894_s3 + $0x54] sm:$0xf] %vm868_vm2, %v1068_v9  ;;  %v451_v17 = vpop.f32.mrb[50].mxu0 }
 0x13c   :  { %v571_v18 = vpop.f32.mrb[50].mxu1  ;;  %920 = vst.msk [vmem:[%s1894_s3 + $0xcc] sm:$0xf] %vm868_vm2, %v1098_v12  ;;  %1382 = vtanh.f32 %v449_v13  ;;  %v452_v19 = vadd.f32 %v1604_v31, %v451_v17  ;;  %v1187_v20 = vpop.f32.mrb[51].mxu0 }
 0x13d   :  { %v572_v21 = vadd.f32 %v1604_v31, %v571_v18  ;;  %v1247_v22 = vpop.f32.mrb[51].mxu1  ;;  %1384 = vtanh.f32 %v569_v15 }
 0x13e   :  { %v1375_v23 = vpop.eup %1374  ;;  %1386 = vtanh.f32 %v452_v19 }
 0x13f   :  { %v1377_v24 = vpop.eup %1376  ;;  %v1069_v25 = vpack.c.bf16 %v1375_v23, %v1375_v23  ;;  %1388 = vtanh.f32 %v572_v21 }
 0x140   :  { %v1379_v26 = vpop.eup %1378  ;;  %v1099_v27 = vpack.c.bf16 %v1377_v24, %v1377_v24 }
 0x141   :  { %v1381_v28 = vpop.eup %1380  ;;  %891 = vst.msk [vmem:[%s1894_s3 + $0x58] sm:$0xf] %vm868_vm2, %v1069_v25  ;;  %v1070_v29 = vpack.c.bf16 %v1379_v26, %v1379_v26  ;;  %v456_v30 = vpop.f32.mrb[52].mxu0 }
 0x142   :  { %v576_v32 = vpop.f32.mrb[52].mxu1  ;;  %921 = vst.msk [vmem:[%s1894_s3 + $0xd0] sm:$0xf] %vm868_vm2, %v1099_v27  ;;  %v1100_v33 = vpack.c.bf16 %v1381_v28, %v1381_v28  ;;  %v457_v34 = vadd.f32 %v1604_v31, %v456_v30  ;;  %v1190_v35 = vpop.f32.mrb[53].mxu0 }
 0x143   :  { %v577_v36 = vadd.f32 %v1604_v31, %v576_v32  ;;  %v1250_v37 = vpop.f32.mrb[53].mxu1  ;;  %892 = vst.msk [vmem:[%s1894_s3 + $0x5c] sm:$0xf] %vm868_vm2, %v1070_v29  ;;  %v459_v38 = vpop.f32.mrb[54].mxu0 }
 0x144   :  { %v579_v39 = vpop.f32.mrb[54].mxu1  ;;  %922 = vst.msk [vmem:[%s1894_s3 + $0xd4] sm:$0xf] %vm868_vm2, %v1100_v33  ;;  %1390 = vtanh.f32 %v457_v34  ;;  %v460_v40 = vadd.f32 %v1604_v31, %v459_v38  ;;  %v1191_v41 = vpop.f32.mrb[55].mxu0 }
 0x145   :  { %v1251_v42 = vpop.f32.mrb[55].mxu1  ;;  %1392 = vtanh.f32 %v577_v36 }
 0x146   :  { %v1383_v43 = vpop.eup %1382  ;;  %1394 = vtanh.f32 %v460_v40 }
 0x147   :  { %v1385_v44 = vpop.eup %1384  ;;  %v1071_v45 = vpack.c.bf16 %v1383_v43, %v1383_v43 }
 0x148   :  { %v1387_v46 = vpop.eup %1386  ;;  %v1101_v47 = vpack.c.bf16 %v1385_v44, %v1385_v44 }
 0x149   :  { %v1389_v48 = vpop.eup %1388  ;;  %893 = vst.msk [vmem:[%s1894_s3 + $0x60] sm:$0xf] %vm868_vm2, %v1071_v45  ;;  %v1072_v49 = vpack.c.bf16 %v1387_v46, %v1387_v46  ;;  %v464_v50 = vpop.f32.mrb[56].mxu0 }
 0x14a   :  { %923 = vst.msk [vmem:[%s1894_s3 + $0xd8] sm:$0xf] %vm868_vm2, %v1101_v47  ;;  %v1102_v51 = vpack.c.bf16 %v1389_v48, %v1389_v48  ;;  %v465_v52 = vadd.f32 %v1604_v31, %v464_v50  ;;  %v1194_v53 = vpop.f32.mrb[57].mxu0 }
 0x14b   :  { %894 = vst.msk [vmem:[%s1894_s3 + $0x64] sm:$0xf] %vm868_vm2, %v1072_v49  ;;  %v467_v54 = vpop.f32.mrb[58].mxu0 }
 0x14c   :  { %924 = vst.msk [vmem:[%s1894_s3 + $0xdc] sm:$0xf] %vm868_vm2, %v1102_v51  ;;  %1396 = vtanh.f32 %v465_v52  ;;  %v468_v55 = vadd.f32 %v1604_v31, %v467_v54  ;;  %v1195_v56 = vpop.f32.mrb[59].mxu0 }
 0x14e   :  { %v1391_v57 = vpop.eup %1390  ;;  %1398 = vtanh.f32 %v468_v55 }
 0x14f   :  { %v1393_v58 = vpop.eup %1392  ;;  %v1073_v59 = vpack.c.bf16 %v1391_v57, %v1391_v57 }
 0x150   :  { %v1395_v60 = vpop.eup %1394  ;;  %v1103_v61 = vpack.c.bf16 %v1393_v58, %v1393_v58 }
 0x151   :  { %895 = vst.msk [vmem:[%s1894_s3 + $0x68] sm:$0xf] %vm868_vm2, %v1073_v59  ;;  %v1074_v62 = vpack.c.bf16 %v1395_v60, %v1395_v60 }
 0x152   :  { %925 = vst.msk [vmem:[%s1894_s3 + $0xe0] sm:$0xf] %vm868_vm2, %v1103_v61 }
 0x153   :  { %896 = vst.msk [vmem:[%s1894_s3 + $0x6c] sm:$0xf] %vm868_vm2, %v1074_v62 }
 0x156   :  { %v1397_v31 = vpop.eup %1396 }
 0x157   :  { %v1075_v63 = vpack.c.bf16 %v1397_v31, %v1397_v31 }
 0x158   :  { %v1399_v0 = vpop.eup %1398 }
 0x159   :  { %897 = vst.msk [vmem:[%s1894_s3 + $0x70] sm:$0xf] %vm868_vm2, %v1075_v63  ;;  %v1076_v1 = vpack.c.bf16 %v1399_v0, %v1399_v0 }
 0x15b   :  { %898 = vst.msk [vmem:[%s1894_s3 + $0x74] sm:$0xf] %vm868_vm2, %v1076_v1 }

// kernel: mnist_convnet_forward.4
= control target key start
LH: loop header
LB: loop body
LE: loop exit
PB: predicated region body
PF: predicated region fallthrough
CT: control target
= control target key end

     0   :  { %vm423_vm0 = vcmask 257024   ;;  %s862_s1 = inlined_call_operand.vmem [shape: bf16[256,32], index: 1, kind: input, shape index: {}]   ;;  %s863_s0 = inlined_call_operand.vmem [shape: bf16[128,256], index: 0, kind: input, shape index: {}]   ;;  %s864_s2 = inlined_call_operand.vmem [shape: f32[1,32], index: 2, kind: input, shape index: {}]   ;;  %s865_s3 = inlined_call_operand.vmem [shape: bf16[128,32], index: 3, kind: output, shape index: {}]  }
   0x1   :  { %v589_v0 = vld [vmem:[%s862_s1 + $0x40] sm:$0xff]   ;;  %v591_v2 = vld [vmem:[%s862_s1 + $0x48] sm:$0xff]   ;;  %v593_v4 = vld [vmem:[%s862_s1 + $0x50] sm:$0xff]  }
   0x2   :  { %v590_v1 = vld [vmem:[%s862_s1] sm:$0xff]   ;;  %509 = vmatprep.subr.bf16.mxu0 %v589_v0  ;;  %573 = vmatprep.subr.bf16.mxu1 %v589_v0  ;;  %v592_v3 = vld [vmem:[%s862_s1 + $0x8] sm:$0xff]   ;;  %v594_v5 = vld [vmem:[%s862_s1 + $0x10] sm:$0xff]  }
   0x3   :  { %510 = vmatpush3.bf16.msra.mxu0 %v590_v1  ;;  %581 = vmatpush3.bf16.msra.mxu1 %v590_v1  ;;  %v595_v6 = vld [vmem:[%s862_s1 + $0x58] sm:$0xff]   ;;  %v597_v8 = vld [vmem:[%s862_s1 + $0x60] sm:$0xff]   ;;  %v599_v10 = vld [vmem:[%s862_s1 + $0x68] sm:$0xff]  }
   0x4   :  { %511 = vmatprep.subr.bf16.mxu0 %v591_v2  ;;  %574 = vmatprep.subr.bf16.mxu1 %v591_v2  ;;  %v596_v7 = vld [vmem:[%s862_s1 + $0x18] sm:$0xff]   ;;  %v598_v9 = vld [vmem:[%s862_s1 + $0x20] sm:$0xff]   ;;  %v600_v13 = vld [vmem:[%s862_s1 + $0x28] sm:$0xff]  }
   0x5   :  { %v607_v11 = vld [vmem:[%s863_s0 + $0x4] ss:$8 sps:$4 sm:$0xff]   ;;  %v601_v14 = vld [vmem:[%s862_s1 + $0x70] sm:$0xff]   ;;  %v603_v16 = vld [vmem:[%s862_s1 + $0x78] sm:$0xff]  }
   0x6   :  { %v610_v12 = vld [vmem:[%s863_s0 + $0x44] ss:$8 sps:$4 sm:$0xff]   ;;  %278 = vmatprep.mubr.bf16.mxu0 %v607_v11  ;;  %v602_v15 = vld [vmem:[%s862_s1 + $0x30] sm:$0xff]   ;;  %v604_v17 = vld [vmem:[%s862_s1 + $0x38] sm:$0xff]  }
   0x7   :  { %512 = vmatpush3.bf16.msra.mxu0 %v592_v3  ;;  %582 = vmatpush3.bf16.msra.mxu1 %v592_v3  ;;  %v605_v18 = vld [vmem:[%s863_s0] ss:$8 sps:$4 sm:$0xff]   ;;  %v611_v20 = vld [vmem:[%s863_s0 + $0x14] ss:$8 sps:$4 sm:$0xff]   ;;  %v615_v22 = vld [vmem:[%s863_s0 + $0x10] ss:$8 sps:$4 sm:$0xff]  }
   0x8   :  { %513 = vmatprep.subr.bf16.mxu0 %v593_v4  ;;  %575 = vmatprep.subr.bf16.mxu1 %v593_v4  ;;  %v608_v19 = vld [vmem:[%s863_s0 + $0x40] ss:$8 sps:$4 sm:$0xff]   ;;  %v613_v21 = vld [vmem:[%s863_s0 + $0x54] ss:$8 sps:$4 sm:$0xff]   ;;  %v616_v23 = vld [vmem:[%s863_s0 + $0x50] ss:$8 sps:$4 sm:$0xff]  }
   0x9   :  { %310 = vmatprep.mubr.bf16.mxu1 %v610_v12  ;;  %v617_v24 = vld [vmem:[%s863_s0 + $0x24] ss:$8 sps:$4 sm:$0xff]   ;;  %v621_v26 = vld [vmem:[%s863_s0 + $0x20] ss:$8 sps:$4 sm:$0xff]   ;;  %v623_v28 = vld [vmem:[%s863_s0 + $0x34] ss:$8 sps:$4 sm:$0xff]  }
   0xa   :  { %v619_v25 = vld [vmem:[%s863_s0 + $0x64] ss:$8 sps:$4 sm:$0xff]   ;;  %v622_v27 = vld [vmem:[%s863_s0 + $0x60] ss:$8 sps:$4 sm:$0xff]   ;;  %v625_v29 = vld [vmem:[%s863_s0 + $0x74] ss:$8 sps:$4 sm:$0xff]  }
   0xb   :  { %514 = vmatpush3.bf16.msra.mxu0 %v594_v5  ;;  %583 = vmatpush3.bf16.msra.mxu1 %v594_v5  ;;  %v627_v30 = vld [vmem:[%s863_s0 + $0x30] ss:$8 sps:$4 sm:$0xff]   ;;  %v780_v34 = vld [vmem:[%s864_s2] ss:$0 sm:$0xff] }
   0xc   :  { %515 = vmatprep.subr.bf16.mxu0 %v595_v6  ;;  %576 = vmatprep.subr.bf16.mxu1 %v595_v6  ;;  %v628_v31 = vld [vmem:[%s863_s0 + $0x70] ss:$8 sps:$4 sm:$0xff]  }
   0xf   :  { %516 = vmatpush3.bf16.msra.mxu0 %v596_v7  ;;  %584 = vmatpush3.bf16.msra.mxu1 %v596_v7 }
  0x10   :  { %517 = vmatprep.subr.bf16.mxu0 %v597_v8  ;;  %577 = vmatprep.subr.bf16.mxu1 %v597_v8 }
  0x13   :  { %518 = vmatpush3.bf16.msra.mxu0 %v598_v9  ;;  %585 = vmatpush3.bf16.msra.mxu1 %v598_v9 }
  0x14   :  { %519 = vmatprep.subr.bf16.mxu0 %v599_v10  ;;  %578 = vmatprep.subr.bf16.mxu1 %v599_v10 }
  0x17   :  { %520 = vmatpush3.bf16.msra.mxu0 %v600_v13  ;;  %586 = vmatpush3.bf16.msra.mxu1 %v600_v13 }
  0x18   :  { %521 = vmatprep.subr.bf16.mxu0 %v601_v14  ;;  %579 = vmatprep.subr.bf16.mxu1 %v601_v14 }
  0x1b   :  { %522 = vmatpush3.bf16.msra.mxu0 %v602_v15  ;;  %587 = vmatpush3.bf16.msra.mxu1 %v602_v15 }
  0x1c   :  { %523 = vmatprep.subr.bf16.mxu0 %v603_v16  ;;  %580 = vmatprep.subr.bf16.mxu1 %v603_v16 }
  0x1f   :  { %524 = vmatpush3.bf16.msra.mxu0 %v604_v17  ;;  %588 = vmatpush3.bf16.msra.mxu1 %v604_v17 }
  0x22   :  { %279 = vmatmul.mubr.bf16.vlgmr.msra.gmra.mrb[0].mxu0 %v605_v18  ;;  %311 = vmatmul.mubr.bf16.vlgmr.msra.gmra.mrb[0].mxu1 %v608_v19 }
  0x23   :  { %286 = vmatprep.mubr.bf16.mxu0 %v611_v20  ;;  %318 = vmatprep.mubr.bf16.mxu1 %v613_v21 }
  0x2a   :  { %287 = vmatmul.mubr.bf16.gmra.mrb[4].mxu0 %v615_v22  ;;  %319 = vmatmul.mubr.bf16.gmra.mrb[4].mxu1 %v616_v23 }
  0x2b   :  { %294 = vmatprep.mubr.bf16.mxu0 %v617_v24  ;;  %326 = vmatprep.mubr.bf16.mxu1 %v619_v25 }
  0x32   :  { %295 = vmatmul.mubr.bf16.gmra.mrb[8].mxu0 %v621_v26  ;;  %327 = vmatmul.mubr.bf16.gmra.mrb[8].mxu1 %v622_v27 }
  0x33   :  { %302 = vmatprep.mubr.bf16.mxu0 %v623_v28  ;;  %334 = vmatprep.mubr.bf16.mxu1 %v625_v29 }
  0x3a   :  { %303 = vmatmul.mubr.bf16.gmra.mrb[12].mxu0 %v627_v30  ;;  %335 = vmatmul.mubr.bf16.gmra.mrb[12].mxu1 %v628_v31 }
  0xf5   :  { %v525_v32 = vpop.f32.mrb[0].mxu0  ;;  %v549_v33 = vpop.f32.mrb[0].mxu1 }
  0xf6   :  { %v526_v35 = vpop.f32.mrb[1].mxu0  ;;  %v550_v36 = vpop.f32.mrb[1].mxu1 }
  0xf7   :  { %v527_v37 = vadd.f32 %v526_v35, %v525_v32  ;;  %v551_v38 = vadd.f32 %v550_v36, %v549_v33  ;;  %v528_v39 = vpop.f32.mrb[2].mxu0  ;;  %v552_v40 = vpop.f32.mrb[2].mxu1 }
  0xf8   :  { %v529_v41 = vpop.f32.mrb[3].mxu0  ;;  %v553_v42 = vpop.f32.mrb[3].mxu1 }
  0xf9   :  { %v281_v43 = vadd.f32 %v527_v37, %v780_v34  ;;  %v313_v44 = vadd.f32 %v551_v38, %v780_v34  ;;  %v530_v45 = vadd.f32 %v529_v41, %v528_v39  ;;  %v554_v46 = vadd.f32 %v553_v42, %v552_v40 }
  0xfb   :  { %629 = vtanh.f32 %v281_v43  ;;  %v284_v47 = vadd.f32 %v530_v45, %v780_v34  ;;  %v316_v48 = vadd.f32 %v554_v46, %v780_v34 }
  0xfc   :  { %631 = vtanh.f32 %v313_v44 }
  0xfd   :  { %633 = vtanh.f32 %v284_v47  ;;  %v531_v49 = vpop.f32.mrb[4].mxu0  ;;  %v555_v50 = vpop.f32.mrb[4].mxu1 }
  0xfe   :  { %635 = vtanh.f32 %v316_v48  ;;  %v532_v51 = vpop.f32.mrb[5].mxu0  ;;  %v556_v52 = vpop.f32.mrb[5].mxu1 }
  0xff   :  { %v533_v53 = vadd.f32 %v532_v51, %v531_v49  ;;  %v557_v54 = vadd.f32 %v556_v52, %v555_v50  ;;  %v534_v55 = vpop.f32.mrb[6].mxu0  ;;  %v558_v56 = vpop.f32.mrb[6].mxu1 }
 0x100   :  { %v535_v57 = vpop.f32.mrb[7].mxu0  ;;  %v559_v58 = vpop.f32.mrb[7].mxu1 }
 0x101   :  { %v289_v59 = vadd.f32 %v533_v53, %v780_v34  ;;  %v321_v60 = vadd.f32 %v557_v54, %v780_v34  ;;  %v536_v61 = vadd.f32 %v535_v57, %v534_v55  ;;  %v560_v62 = vadd.f32 %v559_v58, %v558_v56 }
 0x103   :  { %637 = vtanh.f32 %v289_v59  ;;  %v292_v63 = vadd.f32 %v536_v61, %v780_v34  ;;  %v324_v0 = vadd.f32 %v560_v62, %v780_v34 }
 0x104   :  { %639 = vtanh.f32 %v321_v60 }
 0x105   :  { %v630_v1 = vpop.eup %629  ;;  %641 = vtanh.f32 %v292_v63  ;;  %v537_v2 = vpop.f32.mrb[8].mxu0 }
 0x106   :  { %v561_v3 = vpop.f32.mrb[8].mxu1  ;;  %v632_v4 = vpop.eup %631  ;;  %v493_v5 = vpack.c.bf16 %v630_v1, %v630_v1  ;;  %643 = vtanh.f32 %v324_v0 }
 0x107   :  { %v538_v6 = vpop.f32.mrb[9].mxu0  ;;  %v562_v7 = vpop.f32.mrb[9].mxu1  ;;  %v501_v9 = vpack.c.bf16 %v632_v4, %v632_v4 }
 0x108   :  { %v634_v8 = vpop.eup %633  ;;  %v539_v10 = vadd.f32 %v538_v6, %v537_v2  ;;  %v563_v11 = vadd.f32 %v562_v7, %v561_v3  ;;  %v540_v12 = vpop.f32.mrb[10].mxu0  ;;  %424 = vst.msk [vmem:[%s865_s3] sm:$0xf] %vm423_vm0, %v493_v5 }
 0x109   :  { %v564_v13 = vpop.f32.mrb[10].mxu1  ;;  %v636_v14 = vpop.eup %635  ;;  %v494_v15 = vpack.c.bf16 %v634_v8, %v634_v8  ;;  %432 = vst.msk [vmem:[%s865_s3 + $0x20] sm:$0xf] %vm423_vm0, %v501_v9 }
 0x10a   :  { %v541_v16 = vpop.f32.mrb[11].mxu0  ;;  %v565_v17 = vpop.f32.mrb[11].mxu1  ;;  %v502_v18 = vpack.c.bf16 %v636_v14, %v636_v14  ;;  %v297_v19 = vadd.f32 %v539_v10, %v780_v34  ;;  %v329_v20 = vadd.f32 %v563_v11, %v780_v34 }
 0x10b   :  { %v542_v21 = vadd.f32 %v541_v16, %v540_v12  ;;  %425 = vst.msk [vmem:[%s865_s3 + $0x4] sm:$0xf] %vm423_vm0, %v494_v15  ;;  %v566_v22 = vadd.f32 %v565_v17, %v564_v13 }
 0x10c   :  { %433 = vst.msk [vmem:[%s865_s3 + $0x24] sm:$0xf] %vm423_vm0, %v502_v18  ;;  %645 = vtanh.f32 %v297_v19 }
 0x10d   :  { %v300_v23 = vadd.f32 %v542_v21, %v780_v34  ;;  %647 = vtanh.f32 %v329_v20  ;;  %v332_v24 = vadd.f32 %v566_v22, %v780_v34  ;;  %v638_v25 = vpop.eup %637  ;;  %v543_v26 = vpop.f32.mrb[12].mxu0 }
 0x10e   :  { %v567_v27 = vpop.f32.mrb[12].mxu1  ;;  %v640_v28 = vpop.eup %639  ;;  %v495_v29 = vpack.c.bf16 %v638_v25, %v638_v25 }
 0x10f   :  { %649 = vtanh.f32 %v300_v23  ;;  %v544_v30 = vpop.f32.mrb[13].mxu0  ;;  %v568_v31 = vpop.f32.mrb[13].mxu1  ;;  %v503_v33 = vpack.c.bf16 %v640_v28, %v640_v28 }
 0x110   :  { %651 = vtanh.f32 %v332_v24  ;;  %v642_v32 = vpop.eup %641  ;;  %v545_v35 = vadd.f32 %v544_v30, %v543_v26  ;;  %v569_v36 = vadd.f32 %v568_v31, %v567_v27  ;;  %v546_v37 = vpop.f32.mrb[14].mxu0  ;;  %426 = vst.msk [vmem:[%s865_s3 + $0x8] sm:$0xf] %vm423_vm0, %v495_v29 }
 0x111   :  { %v570_v38 = vpop.f32.mrb[14].mxu1  ;;  %v644_v39 = vpop.eup %643  ;;  %v496_v40 = vpack.c.bf16 %v642_v32, %v642_v32  ;;  %434 = vst.msk [vmem:[%s865_s3 + $0x28] sm:$0xf] %vm423_vm0, %v503_v33 }
 0x112   :  { %v547_v41 = vpop.f32.mrb[15].mxu0  ;;  %v571_v42 = vpop.f32.mrb[15].mxu1  ;;  %v504_v43 = vpack.c.bf16 %v644_v39, %v644_v39  ;;  %v305_v44 = vadd.f32 %v545_v35, %v780_v34  ;;  %v337_v45 = vadd.f32 %v569_v36, %v780_v34 }
 0x113   :  { %v548_v46 = vadd.f32 %v547_v41, %v546_v37  ;;  %427 = vst.msk [vmem:[%s865_s3 + $0xc] sm:$0xf] %vm423_vm0, %v496_v40  ;;  %v572_v47 = vadd.f32 %v571_v42, %v570_v38 }
 0x114   :  { %435 = vst.msk [vmem:[%s865_s3 + $0x2c] sm:$0xf] %vm423_vm0, %v504_v43  ;;  %653 = vtanh.f32 %v305_v44 }
 0x115   :  { %v308_v48 = vadd.f32 %v548_v46, %v780_v34  ;;  %655 = vtanh.f32 %v337_v45  ;;  %v340_v49 = vadd.f32 %v572_v47, %v780_v34 }
 0x116   :  { %v646_v50 = vpop.eup %645 }
 0x117   :  { %657 = vtanh.f32 %v308_v48  ;;  %v648_v51 = vpop.eup %647  ;;  %v497_v52 = vpack.c.bf16 %v646_v50, %v646_v50 }
 0x118   :  { %659 = vtanh.f32 %v340_v49  ;;  %v505_v54 = vpack.c.bf16 %v648_v51, %v648_v51 }
 0x119   :  { %v650_v53 = vpop.eup %649  ;;  %428 = vst.msk [vmem:[%s865_s3 + $0x10] sm:$0xf] %vm423_vm0, %v497_v52 }
 0x11a   :  { %v652_v55 = vpop.eup %651  ;;  %v498_v56 = vpack.c.bf16 %v650_v53, %v650_v53  ;;  %436 = vst.msk [vmem:[%s865_s3 + $0x30] sm:$0xf] %vm423_vm0, %v505_v54 }
 0x11b   :  { %v506_v34 = vpack.c.bf16 %v652_v55, %v652_v55 }
 0x11c   :  { %429 = vst.msk [vmem:[%s865_s3 + $0x14] sm:$0xf] %vm423_vm0, %v498_v56 }
 0x11d   :  { %437 = vst.msk [vmem:[%s865_s3 + $0x34] sm:$0xf] %vm423_vm0, %v506_v34 }
 0x11e   :  { %v654_v57 = vpop.eup %653 }
 0x11f   :  { %v656_v58 = vpop.eup %655  ;;  %v499_v59 = vpack.c.bf16 %v654_v57, %v654_v57 }
 0x120   :  { %v507_v61 = vpack.c.bf16 %v656_v58, %v656_v58 }
 0x121   :  { %v658_v60 = vpop.eup %657  ;;  %430 = vst.msk [vmem:[%s865_s3 + $0x18] sm:$0xf] %vm423_vm0, %v499_v59 }
 0x122   :  { %v660_v62 = vpop.eup %659  ;;  %v500_v63 = vpack.c.bf16 %v658_v60, %v658_v60  ;;  %438 = vst.msk [vmem:[%s865_s3 + $0x38] sm:$0xf] %vm423_vm0, %v507_v61 }
 0x123   :  { %v508_v0 = vpack.c.bf16 %v660_v62, %v660_v62 }
 0x124   :  { %431 = vst.msk [vmem:[%s865_s3 + $0x1c] sm:$0xf] %vm423_vm0, %v500_v63 }
 0x125   :  { %439 = vst.msk [vmem:[%s865_s3 + $0x3c] sm:$0xf] %vm423_vm0, %v508_v0 }

// kernel: mnist_convnet_forward.5
= control target key start
LH: loop header
LB: loop body
LE: loop exit
PB: predicated region body
PF: predicated region fallthrough
CT: control target
= control target key end

     0   :  { %v282_v36 = vlaneseq  ;;  %v2982_v37 = vmov 1966171168   ;;  %s3911_s0 = inlined_call_operand.vmem [shape: bf16[2,2048], index: 0, kind: input, shape index: {}]   ;;  %s3912_s1 = inlined_call_operand.vmem [shape: bf16[2048,256], index: 1, kind: input, shape index: {}]   ;;  %s3913_s2 = inlined_call_operand.vmem [shape: f32[1,256], index: 2, kind: input, shape index: {}]   ;;  %s3914_s3 = inlined_call_operand.vmem [shape: bf16[256,10], index: 3, kind: input, shape index: {}]   ;;  %s3915_s4 = inlined_call_operand.vmem [shape: f32[1,10], index: 4, kind: input, shape index: {}]   ;;  %s3916_s5 = inlined_call_operand.hbm [shape: f32[2,10], index: 5, kind: output, shape index: {}]  }
   0x1   :  { %v2548_v0 = vld [vmem:[%s3912_s1 + $0x4] ss:$8 sps:$4 sm:$0xff]   ;;  %v2552_v2 = vld [vmem:[%s3912_s1] ss:$8 sps:$4 sm:$0xff]   ;;  %v2554_v4 = vld [vmem:[%s3912_s1 + $0x14] ss:$8 sps:$4 sm:$0xff]   ;;  %v296_v38 = vunpack.c.l.s4 %v2982_v37 }
   0x2   :  { %v2550_v1 = vld [vmem:[%s3912_s1 + $0x404] ss:$8 sps:$4 sm:$0xff]   ;;  %1688 = vmatprep.subr.bf16.mxu1 %v2548_v0  ;;  %v2553_v3 = vld [vmem:[%s3912_s1 + $0x400] ss:$8 sps:$4 sm:$0xff]   ;;  %v2556_v5 = vld [vmem:[%s3912_s1 + $0x414] ss:$8 sps:$4 sm:$0xff]  }
   0x3   :  { %1852 = vmatprep.subr.bf16.mxu0 %v2550_v1  ;;  %1689 = vmatpush1.bf16.msra.mxu1 %v2552_v2  ;;  %v2558_v6 = vld [vmem:[%s3912_s1 + $0x10] ss:$8 sps:$4 sm:$0xff]   ;;  %v2560_v8 = vld [vmem:[%s3912_s1 + $0x24] ss:$8 sps:$4 sm:$0xff]   ;;  %v2564_v10 = vld [vmem:[%s3912_s1 + $0x20] ss:$8 sps:$4 sm:$0xff]   ;;  %v297_v43 = vunpack.c.0.s8 %v296_v38 }
   0x4   :  { %1853 = vmatpush1.bf16.msra.mxu0 %v2553_v3  ;;  %1690 = vmatprep.subr.bf16.mxu1 %v2554_v4  ;;  %v2559_v7 = vld [vmem:[%s3912_s1 + $0x410] ss:$8 sps:$4 sm:$0xff]   ;;  %v2562_v9 = vld [vmem:[%s3912_s1 + $0x424] ss:$8 sps:$4 sm:$0xff]   ;;  %v2565_v11 = vld [vmem:[%s3912_s1 + $0x420] ss:$8 sps:$4 sm:$0xff]  }
   0x5   :  { %1854 = vmatprep.subr.bf16.mxu0 %v2556_v5  ;;  %v2566_v12 = vld [vmem:[%s3912_s1 + $0x34] ss:$8 sps:$4 sm:$0xff]   ;;  %v2570_v14 = vld [vmem:[%s3912_s1 + $0x30] ss:$8 sps:$4 sm:$0xff]   ;;  %v2572_v16 = vld [vmem:[%s3912_s1 + $0x44] ss:$8 sps:$4 sm:$0xff]  }
   0x6   :  { %v2568_v13 = vld [vmem:[%s3912_s1 + $0x434] ss:$8 sps:$4 sm:$0xff]   ;;  %v2571_v15 = vld [vmem:[%s3912_s1 + $0x430] ss:$8 sps:$4 sm:$0xff]   ;;  %v2574_v17 = vld [vmem:[%s3912_s1 + $0x444] ss:$8 sps:$4 sm:$0xff]  }
   0x7   :  { %1691 = vmatpush1.bf16.msra.mxu1 %v2558_v6  ;;  %v2576_v18 = vld [vmem:[%s3912_s1 + $0x40] ss:$8 sps:$4 sm:$0xff]   ;;  %v2578_v20 = vld [vmem:[%s3912_s1 + $0x54] ss:$8 sps:$4 sm:$0xff]   ;;  %v2582_v22 = vld [vmem:[%s3912_s1 + $0x50] ss:$8 sps:$4 sm:$0xff]  }
   0x8   :  { %1855 = vmatpush1.bf16.msra.mxu0 %v2559_v7  ;;  %1692 = vmatprep.subr.bf16.mxu1 %v2560_v8  ;;  %v2577_v19 = vld [vmem:[%s3912_s1 + $0x440] ss:$8 sps:$4 sm:$0xff]   ;;  %v2580_v21 = vld [vmem:[%s3912_s1 + $0x454] ss:$8 sps:$4 sm:$0xff]   ;;  %v2583_v23 = vld [vmem:[%s3912_s1 + $0x450] ss:$8 sps:$4 sm:$0xff]  }
   0x9   :  { %1856 = vmatprep.subr.bf16.mxu0 %v2562_v9  ;;  %v2584_v24 = vld [vmem:[%s3912_s1 + $0x64] ss:$8 sps:$4 sm:$0xff]   ;;  %v2588_v26 = vld [vmem:[%s3912_s1 + $0x60] ss:$8 sps:$4 sm:$0xff]   ;;  %v2590_v28 = vld [vmem:[%s3912_s1 + $0x74] ss:$8 sps:$4 sm:$0xff]  }
   0xa   :  { %v2586_v25 = vld [vmem:[%s3912_s1 + $0x464] ss:$8 sps:$4 sm:$0xff]   ;;  %v2589_v27 = vld [vmem:[%s3912_s1 + $0x460] ss:$8 sps:$4 sm:$0xff]   ;;  %v2592_v29 = vld [vmem:[%s3912_s1 + $0x474] ss:$8 sps:$4 sm:$0xff]  }
   0xb   :  { %1693 = vmatpush1.bf16.msra.mxu1 %v2564_v10  ;;  %v2594_v30 = vld [vmem:[%s3912_s1 + $0x70] ss:$8 sps:$4 sm:$0xff]   ;;  %v2596_v32 = vld [vmem:[%s3912_s1 + $0x84] ss:$8 sps:$4 sm:$0xff]   ;;  %v2600_v34 = vld [vmem:[%s3912_s1 + $0x80] ss:$8 sps:$4 sm:$0xff]  }
   0xc   :  { %1857 = vmatpush1.bf16.msra.mxu0 %v2565_v11  ;;  %1694 = vmatprep.subr.bf16.mxu1 %v2566_v12  ;;  %v2595_v31 = vld [vmem:[%s3912_s1 + $0x470] ss:$8 sps:$4 sm:$0xff]   ;;  %v2598_v33 = vld [vmem:[%s3912_s1 + $0x484] ss:$8 sps:$4 sm:$0xff]   ;;  %v2601_v35 = vld [vmem:[%s3912_s1 + $0x480] ss:$8 sps:$4 sm:$0xff]  }
   0xd   :  { %1858 = vmatprep.subr.bf16.mxu0 %v2568_v13  ;;  %v2602_v39 = vld [vmem:[%s3912_s1 + $0x94] ss:$8 sps:$4 sm:$0xff]   ;;  %v2606_v41 = vld [vmem:[%s3912_s1 + $0x90] ss:$8 sps:$4 sm:$0xff]   ;;  %v3131_v42 = vshrl.u32 %v282_v36, 7  ;;  %v22_v52 = vld [vmem:[%s3911_s0] sm:$0xff] }
   0xe   :  { %v2604_v40 = vld [vmem:[%s3912_s1 + $0x494] ss:$8 sps:$4 sm:$0xff]   ;;  %v2607_v44 = vld [vmem:[%s3912_s1 + $0x490] ss:$8 sps:$4 sm:$0xff]   ;;  %v2608_v45 = vld [vmem:[%s3912_s1 + $0xa4] ss:$8 sps:$4 sm:$0xff]   ;;  %v294_v12 = vcombine.high %v22_v52, %v22_v52 }
   0xf   :  { %1695 = vmatpush1.bf16.msra.mxu1 %v2570_v14  ;;  %v2610_v46 = vld [vmem:[%s3912_s1 + $0x4a4] ss:$8 sps:$4 sm:$0xff]   ;;  %v2612_v47 = vld [vmem:[%s3912_s1 + $0xa0] ss:$8 sps:$4 sm:$0xff]   ;;  %v3149_v49 = vsub.s32 %v297_v43, %v3131_v42  ;;  %v2614_v50 = vld [vmem:[%s3912_s1 + $0xb4] ss:$8 sps:$4 sm:$0xff]  }
  0x10   :  { %1859 = vmatpush1.bf16.msra.mxu0 %v2571_v15  ;;  %1696 = vmatprep.subr.bf16.mxu1 %v2572_v16  ;;  %v2613_v48 = vld [vmem:[%s3912_s1 + $0x4a0] ss:$8 sps:$4 sm:$0xff]   ;;  %v2616_v51 = vld [vmem:[%s3912_s1 + $0x4b4] ss:$8 sps:$4 sm:$0xff]   ;;  %v2618_v53 = vld [vmem:[%s3912_s1 + $0xb0] ss:$8 sps:$4 sm:$0xff]  }
  0x11   :  { %1860 = vmatprep.subr.bf16.mxu0 %v2574_v17  ;;  %v301_v54 = vrot.slane %v22_v52, %v3149_v49  ;;  %v2619_v55 = vld [vmem:[%s3912_s1 + $0x4b0] ss:$8 sps:$4 sm:$0xff]   ;;  %v23_v56 = vld [vmem:[%s3911_s0 + $0x8] sm:$0xff]  ;;  %v2626_v1 = vld [vmem:[%s3912_s1 + $0xd4] ss:$8 sps:$4 sm:$0xff]  }
  0x12   :  { %v2620_v57 = vld [vmem:[%s3912_s1 + $0xc4] ss:$8 sps:$4 sm:$0xff]   ;;  %v350_v60 = vrot.slane %v23_v56, %v3149_v49  ;;  %v2624_v63 = vld [vmem:[%s3912_s1 + $0xc0] ss:$8 sps:$4 sm:$0xff]   ;;  %v2628_v2 = vld [vmem:[%s3912_s1 + $0x4d4] ss:$8 sps:$4 sm:$0xff]   ;;  %v343_v13 = vcombine.high %v23_v56, %v23_v56 }
  0x13   :  { %1697 = vmatpush1.bf16.msra.mxu1 %v2576_v18  ;;  %v2622_v58 = vld [vmem:[%s3912_s1 + $0x4c4] ss:$8 sps:$4 sm:$0xff]   ;;  %v309_v59 = vcombine.high %v301_v54, %v301_v54  ;;  %v2625_v0 = vld [vmem:[%s3912_s1 + $0x4c0] ss:$8 sps:$4 sm:$0xff]   ;;  %v2630_v4 = vld [vmem:[%s3912_s1 + $0xd0] ss:$8 sps:$4 sm:$0xff]   ;;  %v308_v18 = vrot.slane %v294_v12, %v3149_v49 }
  0x14   :  { %1861 = vmatpush1.bf16.msra.mxu0 %v2577_v19  ;;  %1698 = vmatprep.subr.bf16.mxu1 %v2578_v20  ;;  %v358_v62 = vcombine.high %v350_v60, %v350_v60  ;;  %v2631_v5 = vld [vmem:[%s3912_s1 + $0x4d0] ss:$8 sps:$4 sm:$0xff]   ;;  %v2632_v6 = vld [vmem:[%s3912_s1 + $0xe4] ss:$8 sps:$4 sm:$0xff]   ;;  %v2636_v8 = vld [vmem:[%s3912_s1 + $0xe0] ss:$8 sps:$4 sm:$0xff]   ;;  %v357_v19 = vrot.slane %v343_v13, %v3149_v49  ;;  %v3233_v20 = vrot.slane %v301_v54, %v3149_v49 }
  0x15   :  { %1862 = vmatprep.subr.bf16.mxu0 %v2580_v21  ;;  %v3178_v61 = vrot.slane %v309_v59, %v3149_v49  ;;  %v2634_v7 = vld [vmem:[%s3912_s1 + $0x4e4] ss:$8 sps:$4 sm:$0xff]   ;;  %v2637_v9 = vld [vmem:[%s3912_s1 + $0x4e0] ss:$8 sps:$4 sm:$0xff]   ;;  %v2638_v10 = vld [vmem:[%s3912_s1 + $0xf4] ss:$8 sps:$4 sm:$0xff]   ;;  %v3236_v21 = vrot.slane %v350_v60, %v3149_v49 }
  0x16   :  { %v380_v3 = vrot.slane %v358_v62, %v3149_v49  ;;  %v2640_v11 = vld [vmem:[%s3912_s1 + $0x4f4] ss:$8 sps:$4 sm:$0xff]   ;;  %v2642_v14 = vld [vmem:[%s3912_s1 + $0xf0] ss:$8 sps:$4 sm:$0xff]   ;;  %v2647_v16 = vld [vmem:[%s3912_s1 + $0x104] ss:$8 sps:$4 sm:$0xff]  }
  0x17   :  { %1699 = vmatpush1.bf16.msra.mxu1 %v2582_v22  ;;  %1720 = vmatprep.mubr.bf16.mxu1 %v3178_v61  ;;  %v2643_v15 = vld [vmem:[%s3912_s1 + $0x4f0] ss:$8 sps:$4 sm:$0xff]   ;;  %v2651_v17 = vld [vmem:[%s3912_s1 + $0x504] ss:$8 sps:$4 sm:$0xff]   ;;  %v310_v22 = vcombine.high %v308_v18, %v308_v18  ;;  %v2658_v38 = vld [vmem:[%s3912_s1 + $0x120] ss:$8 sps:$4 sm:$0xff]  }
  0x18   :  { %1863 = vmatpush1.bf16.msra.mxu0 %v2583_v23  ;;  %1700 = vmatprep.subr.bf16.mxu1 %v2584_v24  ;;  %v359_v23 = vcombine.high %v357_v19, %v357_v19  ;;  %v2645_v24 = vld [vmem:[%s3912_s1 + $0x100] ss:$8 sps:$4 sm:$0xff]   ;;  %v2660_v36 = vld [vmem:[%s3912_s1 + $0x124] ss:$8 sps:$4 sm:$0xff]   ;;  %v2664_v43 = vld [vmem:[%s3912_s1 + $0x130] ss:$8 sps:$4 sm:$0xff]  }
  0x19   :  { %1864 = vmatprep.subr.bf16.mxu0 %v2586_v25  ;;  %1884 = vmatprep.mubr.bf16.mxu0 %v380_v3  ;;  %v2649_v25 = vld [vmem:[%s3912_s1 + $0x500] ss:$8 sps:$4 sm:$0xff]   ;;  %v2663_v37 = vld [vmem:[%s3912_s1 + $0x524] ss:$8 sps:$4 sm:$0xff]   ;;  %v2679_v52 = vld [vmem:[%s3912_s1 + $0x550] ss:$8 sps:$4 sm:$0xff]  }
  0x1a   :  { %v2687_v54 = vld [vmem:[%s3912_s1 + $0x564] ss:$8 sps:$4 sm:$0xff]   ;;  %v2685_v56 = vld [vmem:[%s3912_s1 + $0x560] ss:$8 sps:$4 sm:$0xff]   ;;  %v2688_v59 = vld [vmem:[%s3912_s1 + $0x170] ss:$8 sps:$4 sm:$0xff]  }
  0x1b   :  { %1701 = vmatpush1.bf16.msra.mxu1 %v2588_v26  ;;  %v2654_v26 = vld [vmem:[%s3912_s1 + $0x114] ss:$8 sps:$4 sm:$0xff]   ;;  %v2691_v60 = vld [vmem:[%s3912_s1 + $0x570] ss:$8 sps:$4 sm:$0xff]   ;;  %v2699_v62 = vld [vmem:[%s3912_s1 + $0x584] ss:$8 sps:$4 sm:$0xff]  }
  0x1c   :  { %1865 = vmatpush1.bf16.msra.mxu0 %v2589_v27  ;;  %1702 = vmatprep.subr.bf16.mxu1 %v2590_v28  ;;  %v2657_v27 = vld [vmem:[%s3912_s1 + $0x514] ss:$8 sps:$4 sm:$0xff]   ;;  %v3251_v28 = vrot.slane %v310_v22, %v3149_v49  ;;  %v2715_v12 = vld [vmem:[%s3912_s1 + $0x5b0] ss:$8 sps:$4 sm:$0xff]   ;;  %v2720_v13 = vld [vmem:[%s3912_s1 + $0x1c4] ss:$8 sps:$4 sm:$0xff]  }
  0x1d   :  { %1866 = vmatprep.subr.bf16.mxu0 %v2592_v29  ;;  %v3254_v29 = vrot.slane %v359_v23, %v3149_v49  ;;  %v2727_v22 = vld [vmem:[%s3912_s1 + $0x5d0] ss:$8 sps:$4 sm:$0xff]   ;;  %v2732_v23 = vld [vmem:[%s3912_s1 + $0x1e4] ss:$8 sps:$4 sm:$0xff]  }
  0x1f   :  { %1703 = vmatpush1.bf16.msra.mxu1 %v2594_v30  ;;  %v3257_v30 = vrot.slane %v308_v18, %v3149_v49  ;;  %v2729_v18 = vld [vmem:[%s3912_s1 + $0x5d4] ss:$8 sps:$4 sm:$0xff]  }
  0x20   :  { %1867 = vmatpush1.bf16.msra.mxu0 %v2595_v31  ;;  %1704 = vmatprep.subr.bf16.mxu1 %v2596_v32  ;;  %v341_v31 = vcombine.high %v3178_v61, %v3178_v61  ;;  %v390_v32 = vcombine.high %v380_v3, %v380_v3  ;;  %v2696_v61 = vld [vmem:[%s3912_s1 + $0x184] ss:$8 sps:$4 sm:$0xff]   ;;  %v2700_v3 = vld [vmem:[%s3912_s1 + $0x190] ss:$8 sps:$4 sm:$0xff]  }
  0x21   :  { %1868 = vmatprep.subr.bf16.mxu0 %v2598_v33  ;;  %v3262_v33 = vrot.slane %v357_v19, %v3149_v49  ;;  %v2678_v49 = vld [vmem:[%s3912_s1 + $0x154] ss:$8 sps:$4 sm:$0xff]   ;;  %v2724_v19 = vld [vmem:[%s3912_s1 + $0x1d0] ss:$8 sps:$4 sm:$0xff]  }
  0x23   :  { %1705 = vmatpush1.bf16.msra.mxu1 %v2600_v34  ;;  %v2652_v34 = vld [vmem:[%s3912_s1 + $0x110] ss:$8 sps:$4 sm:$0xff]  }
  0x24   :  { %1869 = vmatpush1.bf16.msra.mxu0 %v2601_v35  ;;  %1706 = vmatprep.subr.bf16.mxu1 %v2602_v39  ;;  %v2655_v35 = vld [vmem:[%s3912_s1 + $0x510] ss:$8 sps:$4 sm:$0xff]   ;;  %v2661_v39 = vld [vmem:[%s3912_s1 + $0x520] ss:$8 sps:$4 sm:$0xff]  }
  0x25   :  { %1870 = vmatprep.subr.bf16.mxu0 %v2604_v40  ;;  %v2666_v40 = vld [vmem:[%s3912_s1 + $0x134] ss:$8 sps:$4 sm:$0xff]  }
  0x27   :  { %1707 = vmatpush1.bf16.msra.mxu1 %v2606_v41  ;;  %v2669_v41 = vld [vmem:[%s3912_s1 + $0x534] ss:$8 sps:$4 sm:$0xff]  }
  0x28   :  { %1871 = vmatpush1.bf16.msra.mxu0 %v2607_v44  ;;  %1708 = vmatprep.subr.bf16.mxu1 %v2608_v45  ;;  %v2667_v44 = vld [vmem:[%s3912_s1 + $0x530] ss:$8 sps:$4 sm:$0xff]   ;;  %v2672_v45 = vld [vmem:[%s3912_s1 + $0x144] ss:$8 sps:$4 sm:$0xff]  }
  0x29   :  { %1872 = vmatprep.subr.bf16.mxu0 %v2610_v46  ;;  %v2675_v46 = vld [vmem:[%s3912_s1 + $0x544] ss:$8 sps:$4 sm:$0xff]  }
  0x2b   :  { %1709 = vmatpush1.bf16.msra.mxu1 %v2612_v47  ;;  %v2670_v47 = vld [vmem:[%s3912_s1 + $0x140] ss:$8 sps:$4 sm:$0xff]  }
  0x2c   :  { %1873 = vmatpush1.bf16.msra.mxu0 %v2613_v48  ;;  %1710 = vmatprep.subr.bf16.mxu1 %v2614_v50  ;;  %v2673_v48 = vld [vmem:[%s3912_s1 + $0x540] ss:$8 sps:$4 sm:$0xff]   ;;  %v2681_v50 = vld [vmem:[%s3912_s1 + $0x554] ss:$8 sps:$4 sm:$0xff]  }
  0x2d   :  { %1874 = vmatprep.subr.bf16.mxu0 %v2616_v51  ;;  %v2676_v51 = vld [vmem:[%s3912_s1 + $0x150] ss:$8 sps:$4 sm:$0xff]  }
  0x2f   :  { %1711 = vmatpush1.bf16.msra.mxu1 %v2618_v53  ;;  %v2684_v53 = vld [vmem:[%s3912_s1 + $0x164] ss:$8 sps:$4 sm:$0xff]  }
  0x30   :  { %1875 = vmatpush1.bf16.msra.mxu0 %v2619_v55  ;;  %1712 = vmatprep.subr.bf16.mxu1 %v2620_v57  ;;  %v2682_v55 = vld [vmem:[%s3912_s1 + $0x160] ss:$8 sps:$4 sm:$0xff]   ;;  %v2690_v57 = vld [vmem:[%s3912_s1 + $0x174] ss:$8 sps:$4 sm:$0xff]  }
  0x31   :  { %1876 = vmatprep.subr.bf16.mxu0 %v2622_v58  ;;  %v2693_v58 = vld [vmem:[%s3912_s1 + $0x574] ss:$8 sps:$4 sm:$0xff]  }
  0x33   :  { %1713 = vmatpush1.bf16.msra.mxu1 %v2624_v63  ;;  %v2694_v63 = vld [vmem:[%s3912_s1 + $0x180] ss:$8 sps:$4 sm:$0xff]  }
  0x34   :  { %1877 = vmatpush1.bf16.msra.mxu0 %v2625_v0  ;;  %1714 = vmatprep.subr.bf16.mxu1 %v2626_v1  ;;  %v2697_v0 = vld [vmem:[%s3912_s1 + $0x580] ss:$8 sps:$4 sm:$0xff]   ;;  %v2702_v1 = vld [vmem:[%s3912_s1 + $0x194] ss:$8 sps:$4 sm:$0xff]  }
  0x35   :  { %1878 = vmatprep.subr.bf16.mxu0 %v2628_v2  ;;  %v2705_v2 = vld [vmem:[%s3912_s1 + $0x594] ss:$8 sps:$4 sm:$0xff]  }
  0x37   :  { %1715 = vmatpush1.bf16.msra.mxu1 %v2630_v4  ;;  %v2703_v4 = vld [vmem:[%s3912_s1 + $0x590] ss:$8 sps:$4 sm:$0xff]  }
  0x38   :  { %1879 = vmatpush1.bf16.msra.mxu0 %v2631_v5  ;;  %1716 = vmatprep.subr.bf16.mxu1 %v2632_v6  ;;  %v2708_v5 = vld [vmem:[%s3912_s1 + $0x1a4] ss:$8 sps:$4 sm:$0xff]  }
  0x39   :  { %1880 = vmatprep.subr.bf16.mxu0 %v2634_v7  ;;  %v2711_v6 = vld [vmem:[%s3912_s1 + $0x5a4] ss:$8 sps:$4 sm:$0xff]   ;;  %v2706_v7 = vld [vmem:[%s3912_s1 + $0x1a0] ss:$8 sps:$4 sm:$0xff]  }
  0x3b   :  { %1717 = vmatpush1.bf16.msra.mxu1 %v2636_v8  ;;  %v2709_v8 = vld [vmem:[%s3912_s1 + $0x5a0] ss:$8 sps:$4 sm:$0xff]  }
  0x3c   :  { %1881 = vmatpush1.bf16.msra.mxu0 %v2637_v9  ;;  %1718 = vmatprep.subr.bf16.mxu1 %v2638_v10  ;;  %v2714_v9 = vld [vmem:[%s3912_s1 + $0x1b4] ss:$8 sps:$4 sm:$0xff]  }
  0x3d   :  { %1882 = vmatprep.subr.bf16.mxu0 %v2640_v11  ;;  %v2717_v10 = vld [vmem:[%s3912_s1 + $0x5b4] ss:$8 sps:$4 sm:$0xff]   ;;  %v2712_v11 = vld [vmem:[%s3912_s1 + $0x1b0] ss:$8 sps:$4 sm:$0xff]  }
  0x3f   :  { %1719 = vmatpush1.bf16.msra.mxu1 %v2642_v14  ;;  %v2723_v14 = vld [vmem:[%s3912_s1 + $0x5c4] ss:$8 sps:$4 sm:$0xff]  }
  0x40   :  { %1883 = vmatpush1.bf16.msra.mxu0 %v2643_v15  ;;  %1729 = vmatprep.subr.bf16.mxu1 %v2647_v16  ;;  %v2718_v15 = vld [vmem:[%s3912_s1 + $0x1c0] ss:$8 sps:$4 sm:$0xff]  }
  0x41   :  { %1893 = vmatprep.subr.bf16.mxu0 %v2651_v17  ;;  %v2721_v16 = vld [vmem:[%s3912_s1 + $0x5c0] ss:$8 sps:$4 sm:$0xff]   ;;  %v2726_v17 = vld [vmem:[%s3912_s1 + $0x1d4] ss:$8 sps:$4 sm:$0xff]  }
  0x42   :  { %1721 = vmatmul.mubr.bf16.vlgmr.msra.gmra.mrb[0].mxu1 %v3233_v20 }
  0x43   :  { %1885 = vmatmul.mubr.bf16.vlgmr.msra.gmra.mrb[0].mxu0 %v3236_v21  ;;  %1730 = vmatpush1.bf16.msra.mxu1 %v2645_v24  ;;  %v2735_v24 = vld [vmem:[%s3912_s1 + $0x5e4] ss:$8 sps:$4 sm:$0xff]  }
  0x44   :  { %1894 = vmatpush1.bf16.msra.mxu0 %v2649_v25  ;;  %1731 = vmatprep.subr.bf16.mxu1 %v2654_v26  ;;  %v2730_v25 = vld [vmem:[%s3912_s1 + $0x1e0] ss:$8 sps:$4 sm:$0xff]  }
  0x45   :  { %1895 = vmatprep.subr.bf16.mxu0 %v2657_v27  ;;  %1761 = vmatprep.mubr.bf16.mxu1 %v341_v31  ;;  %v2733_v26 = vld [vmem:[%s3912_s1 + $0x5e0] ss:$8 sps:$4 sm:$0xff]   ;;  %v2738_v27 = vld [vmem:[%s3912_s1 + $0x1f4] ss:$8 sps:$4 sm:$0xff]  }
  0x46   :  { %1925 = vmatprep.mubr.bf16.mxu0 %v390_v32  ;;  %v2741_v31 = vld [vmem:[%s3912_s1 + $0x5f4] ss:$8 sps:$4 sm:$0xff]   ;;  %v2736_v32 = vld [vmem:[%s3912_s1 + $0x1f0] ss:$8 sps:$4 sm:$0xff]  }
  0x47   :  { %1732 = vmatpush1.bf16.msra.mxu1 %v2652_v34  ;;  %v2739_v34 = vld [vmem:[%s3912_s1 + $0x5f0] ss:$8 sps:$4 sm:$0xff]  }
  0x48   :  { %1896 = vmatpush1.bf16.msra.mxu0 %v2655_v35  ;;  %1733 = vmatprep.subr.bf16.mxu1 %v2660_v36  ;;  %v2744_v35 = vld [vmem:[%s3912_s1 + $0x204] ss:$8 sps:$4 sm:$0xff]  }
  0x49   :  { %1897 = vmatprep.subr.bf16.mxu0 %v2663_v37  ;;  %v2747_v36 = vld [vmem:[%s3912_s1 + $0x604] ss:$8 sps:$4 sm:$0xff]   ;;  %v339_v37 = vcombine.high %v3233_v20, %v3233_v20  ;;  %v2753_v20 = vld [vmem:[%s3912_s1 + $0x614] ss:$8 sps:$4 sm:$0xff]  }
  0x4b   :  { %1734 = vmatpush1.bf16.msra.mxu1 %v2658_v38  ;;  %v388_v38 = vcombine.high %v3236_v21, %v3236_v21  ;;  %v2748_v21 = vld [vmem:[%s3912_s1 + $0x210] ss:$8 sps:$4 sm:$0xff]  }
  0x4c   :  { %1898 = vmatpush1.bf16.msra.mxu0 %v2661_v39  ;;  %1735 = vmatprep.subr.bf16.mxu1 %v2666_v40  ;;  %v2742_v39 = vld [vmem:[%s3912_s1 + $0x200] ss:$8 sps:$4 sm:$0xff]  }
  0x4d   :  { %1899 = vmatprep.subr.bf16.mxu0 %v2669_v41  ;;  %v2745_v40 = vld [vmem:[%s3912_s1 + $0x600] ss:$8 sps:$4 sm:$0xff]   ;;  %v2750_v41 = vld [vmem:[%s3912_s1 + $0x214] ss:$8 sps:$4 sm:$0xff]  }
  0x4f   :  { %1736 = vmatpush1.bf16.msra.mxu1 %v2664_v43  ;;  %v2751_v43 = vld [vmem:[%s3912_s1 + $0x610] ss:$8 sps:$4 sm:$0xff]  }
  0x50   :  { %1900 = vmatpush1.bf16.msra.mxu0 %v2667_v44  ;;  %1737 = vmatprep.subr.bf16.mxu1 %v2672_v45  ;;  %v2756_v44 = vld [vmem:[%s3912_s1 + $0x224] ss:$8 sps:$4 sm:$0xff]  }
  0x51   :  { %1901 = vmatprep.subr.bf16.mxu0 %v2675_v46  ;;  %v2759_v45 = vld [vmem:[%s3912_s1 + $0x624] ss:$8 sps:$4 sm:$0xff]   ;;  %v2754_v46 = vld [vmem:[%s3912_s1 + $0x220] ss:$8 sps:$4 sm:$0xff]  }
  0x53   :  { %1738 = vmatpush1.bf16.msra.mxu1 %v2670_v47  ;;  %v2757_v47 = vld [vmem:[%s3912_s1 + $0x620] ss:$8 sps:$4 sm:$0xff]  }
  0x54   :  { %1902 = vmatpush1.bf16.msra.mxu0 %v2673_v48  ;;  %1739 = vmatprep.subr.bf16.mxu1 %v2678_v49  ;;  %v2762_v48 = vld [vmem:[%s3912_s1 + $0x234] ss:$8 sps:$4 sm:$0xff]  }
  0x55   :  { %1903 = vmatprep.subr.bf16.mxu0 %v2681_v50  ;;  %v2765_v49 = vld [vmem:[%s3912_s1 + $0x634] ss:$8 sps:$4 sm:$0xff]   ;;  %v2760_v50 = vld [vmem:[%s3912_s1 + $0x230] ss:$8 sps:$4 sm:$0xff]  }
  0x57   :  { %1740 = vmatpush1.bf16.msra.mxu1 %v2676_v51  ;;  %v2763_v51 = vld [vmem:[%s3912_s1 + $0x630] ss:$8 sps:$4 sm:$0xff]  }
  0x58   :  { %1904 = vmatpush1.bf16.msra.mxu0 %v2679_v52  ;;  %1741 = vmatprep.subr.bf16.mxu1 %v2684_v53  ;;  %v2768_v52 = vld [vmem:[%s3912_s1 + $0x244] ss:$8 sps:$4 sm:$0xff]  }
  0x59   :  { %1905 = vmatprep.subr.bf16.mxu0 %v2687_v54  ;;  %v2771_v53 = vld [vmem:[%s3912_s1 + $0x644] ss:$8 sps:$4 sm:$0xff]   ;;  %v2766_v54 = vld [vmem:[%s3912_s1 + $0x240] ss:$8 sps:$4 sm:$0xff]  }
  0x5b   :  { %1742 = vmatpush1.bf16.msra.mxu1 %v2682_v55  ;;  %v2769_v55 = vld [vmem:[%s3912_s1 + $0x640] ss:$8 sps:$4 sm:$0xff]  }
  0x5c   :  { %1906 = vmatpush1.bf16.msra.mxu0 %v2685_v56  ;;  %1743 = vmatprep.subr.bf16.mxu1 %v2690_v57  ;;  %v2774_v56 = vld [vmem:[%s3912_s1 + $0x254] ss:$8 sps:$4 sm:$0xff]  }
  0x5d   :  { %1907 = vmatprep.subr.bf16.mxu0 %v2693_v58  ;;  %v2777_v57 = vld [vmem:[%s3912_s1 + $0x654] ss:$8 sps:$4 sm:$0xff]   ;;  %v2772_v58 = vld [vmem:[%s3912_s1 + $0x250] ss:$8 sps:$4 sm:$0xff]  }
  0x5f   :  { %1744 = vmatpush1.bf16.msra.mxu1 %v2688_v59  ;;  %v2775_v59 = vld [vmem:[%s3912_s1 + $0x650] ss:$8 sps:$4 sm:$0xff]  }
  0x60   :  { %1908 = vmatpush1.bf16.msra.mxu0 %v2691_v60  ;;  %1745 = vmatprep.subr.bf16.mxu1 %v2696_v61  ;;  %v2780_v60 = vld [vmem:[%s3912_s1 + $0x264] ss:$8 sps:$4 sm:$0xff]  }
  0x61   :  { %1909 = vmatprep.subr.bf16.mxu0 %v2699_v62  ;;  %v2783_v61 = vld [vmem:[%s3912_s1 + $0x664] ss:$8 sps:$4 sm:$0xff]   ;;  %v2778_v62 = vld [vmem:[%s3912_s1 + $0x260] ss:$8 sps:$4 sm:$0xff]  }
  0x63   :  { %1746 = vmatpush1.bf16.msra.mxu1 %v2694_v63  ;;  %v2781_v63 = vld [vmem:[%s3912_s1 + $0x660] ss:$8 sps:$4 sm:$0xff]  }
  0x64   :  { %1910 = vmatpush1.bf16.msra.mxu0 %v2697_v0  ;;  %1747 = vmatprep.subr.bf16.mxu1 %v2702_v1  ;;  %v2786_v0 = vld [vmem:[%s3912_s1 + $0x274] ss:$8 sps:$4 sm:$0xff]  }
  0x65   :  { %1911 = vmatprep.subr.bf16.mxu0 %v2705_v2  ;;  %v2789_v1 = vld [vmem:[%s3912_s1 + $0x674] ss:$8 sps:$4 sm:$0xff]   ;;  %v2784_v2 = vld [vmem:[%s3912_s1 + $0x270] ss:$8 sps:$4 sm:$0xff]  }
  0x67   :  { %1748 = vmatpush1.bf16.msra.mxu1 %v2700_v3  ;;  %v2787_v3 = vld [vmem:[%s3912_s1 + $0x670] ss:$8 sps:$4 sm:$0xff]  }
  0x68   :  { %1912 = vmatpush1.bf16.msra.mxu0 %v2703_v4  ;;  %1749 = vmatprep.subr.bf16.mxu1 %v2708_v5  ;;  %v2792_v4 = vld [vmem:[%s3912_s1 + $0x284] ss:$8 sps:$4 sm:$0xff]  }
  0x69   :  { %1913 = vmatprep.subr.bf16.mxu0 %v2711_v6  ;;  %v2795_v5 = vld [vmem:[%s3912_s1 + $0x684] ss:$8 sps:$4 sm:$0xff]   ;;  %v2790_v6 = vld [vmem:[%s3912_s1 + $0x280] ss:$8 sps:$4 sm:$0xff]  }
  0x6b   :  { %1750 = vmatpush1.bf16.msra.mxu1 %v2706_v7  ;;  %v2793_v7 = vld [vmem:[%s3912_s1 + $0x680] ss:$8 sps:$4 sm:$0xff]  }
  0x6c   :  { %1914 = vmatpush1.bf16.msra.mxu0 %v2709_v8  ;;  %1751 = vmatprep.subr.bf16.mxu1 %v2714_v9  ;;  %v2798_v8 = vld [vmem:[%s3912_s1 + $0x294] ss:$8 sps:$4 sm:$0xff]  }
  0x6d   :  { %1915 = vmatprep.subr.bf16.mxu0 %v2717_v10  ;;  %v2801_v9 = vld [vmem:[%s3912_s1 + $0x694] ss:$8 sps:$4 sm:$0xff]   ;;  %v2796_v10 = vld [vmem:[%s3912_s1 + $0x290] ss:$8 sps:$4 sm:$0xff]  }
  0x6f   :  { %1752 = vmatpush1.bf16.msra.mxu1 %v2712_v11  ;;  %v2799_v11 = vld [vmem:[%s3912_s1 + $0x690] ss:$8 sps:$4 sm:$0xff]  }
  0x70   :  { %1916 = vmatpush1.bf16.msra.mxu0 %v2715_v12  ;;  %1753 = vmatprep.subr.bf16.mxu1 %v2720_v13  ;;  %v2804_v12 = vld [vmem:[%s3912_s1 + $0x2a4] ss:$8 sps:$4 sm:$0xff]  }
  0x71   :  { %1917 = vmatprep.subr.bf16.mxu0 %v2723_v14  ;;  %v2807_v13 = vld [vmem:[%s3912_s1 + $0x6a4] ss:$8 sps:$4 sm:$0xff]   ;;  %v2802_v14 = vld [vmem:[%s3912_s1 + $0x2a0] ss:$8 sps:$4 sm:$0xff]  }
  0x73   :  { %1754 = vmatpush1.bf16.msra.mxu1 %v2718_v15  ;;  %v2805_v15 = vld [vmem:[%s3912_s1 + $0x6a0] ss:$8 sps:$4 sm:$0xff]  }
  0x74   :  { %1918 = vmatpush1.bf16.msra.mxu0 %v2721_v16  ;;  %1755 = vmatprep.subr.bf16.mxu1 %v2726_v17  ;;  %v2810_v16 = vld [vmem:[%s3912_s1 + $0x2b4] ss:$8 sps:$4 sm:$0xff]  }
  0x75   :  { %1919 = vmatprep.subr.bf16.mxu0 %v2729_v18  ;;  %v2813_v17 = vld [vmem:[%s3912_s1 + $0x6b4] ss:$8 sps:$4 sm:$0xff]   ;;  %v2808_v18 = vld [vmem:[%s3912_s1 + $0x2b0] ss:$8 sps:$4 sm:$0xff]  }
  0x77   :  { %1756 = vmatpush1.bf16.msra.mxu1 %v2724_v19  ;;  %v2811_v19 = vld [vmem:[%s3912_s1 + $0x6b0] ss:$8 sps:$4 sm:$0xff]  }
  0x78   :  { %1920 = vmatpush1.bf16.msra.mxu0 %v2727_v22  ;;  %1757 = vmatprep.subr.bf16.mxu1 %v2732_v23  ;;  %v2816_v22 = vld [vmem:[%s3912_s1 + $0x2c4] ss:$8 sps:$4 sm:$0xff]  }
  0x79   :  { %1921 = vmatprep.subr.bf16.mxu0 %v2735_v24  ;;  %v2819_v23 = vld [vmem:[%s3912_s1 + $0x6c4] ss:$8 sps:$4 sm:$0xff]   ;;  %v2814_v24 = vld [vmem:[%s3912_s1 + $0x2c0] ss:$8 sps:$4 sm:$0xff]  }
  0x7b   :  { %1758 = vmatpush1.bf16.msra.mxu1 %v2730_v25  ;;  %v2817_v25 = vld [vmem:[%s3912_s1 + $0x6c0] ss:$8 sps:$4 sm:$0xff]  }
  0x7c   :  { %1922 = vmatpush1.bf16.msra.mxu0 %v2733_v26  ;;  %1759 = vmatprep.subr.bf16.mxu1 %v2738_v27  ;;  %v2822_v26 = vld [vmem:[%s3912_s1 + $0x2d4] ss:$8 sps:$4 sm:$0xff]  }
  0x7d   :  { %1923 = vmatprep.subr.bf16.mxu0 %v2741_v31  ;;  %v2825_v27 = vld [vmem:[%s3912_s1 + $0x6d4] ss:$8 sps:$4 sm:$0xff]   ;;  %v2820_v31 = vld [vmem:[%s3912_s1 + $0x2d0] ss:$8 sps:$4 sm:$0xff]  }
  0x7f   :  { %1760 = vmatpush1.bf16.msra.mxu1 %v2736_v32  ;;  %v2823_v32 = vld [vmem:[%s3912_s1 + $0x6d0] ss:$8 sps:$4 sm:$0xff]  }
  0x80   :  { %1924 = vmatpush1.bf16.msra.mxu0 %v2739_v34  ;;  %1770 = vmatprep.subr.bf16.mxu1 %v2744_v35  ;;  %v2828_v34 = vld [vmem:[%s3912_s1 + $0x2e4] ss:$8 sps:$4 sm:$0xff]  }
  0x81   :  { %1934 = vmatprep.subr.bf16.mxu0 %v2747_v36  ;;  %v2831_v35 = vld [vmem:[%s3912_s1 + $0x6e4] ss:$8 sps:$4 sm:$0xff]   ;;  %v2826_v36 = vld [vmem:[%s3912_s1 + $0x2e0] ss:$8 sps:$4 sm:$0xff]  }
  0x82   :  { %1762 = vmatmul.mubr.bf16.vlgmr.msra.gmra.mrb[0].mxu1 %v339_v37  ;;  %v2829_v37 = vld [vmem:[%s3912_s1 + $0x6e0] ss:$8 sps:$4 sm:$0xff]  }
  0x83   :  { %1926 = vmatmul.mubr.bf16.vlgmr.msra.gmra.mrb[0].mxu0 %v388_v38  ;;  %1771 = vmatpush1.bf16.msra.mxu1 %v2742_v39 }
  0x84   :  { %1935 = vmatpush1.bf16.msra.mxu0 %v2745_v40  ;;  %1772 = vmatprep.subr.bf16.mxu1 %v2750_v41 }
  0x85   :  { %1936 = vmatprep.subr.bf16.mxu0 %v2753_v20  ;;  %1802 = vmatprep.mubr.bf16.mxu1 %v3251_v28 }
  0x86   :  { %1966 = vmatprep.mubr.bf16.mxu0 %v3254_v29 }
  0x87   :  { %1773 = vmatpush1.bf16.msra.mxu1 %v2748_v21 }
  0x88   :  { %1937 = vmatpush1.bf16.msra.mxu0 %v2751_v43  ;;  %1774 = vmatprep.subr.bf16.mxu1 %v2756_v44 }
  0x89   :  { %1938 = vmatprep.subr.bf16.mxu0 %v2759_v45 }
  0x8b   :  { %1775 = vmatpush1.bf16.msra.mxu1 %v2754_v46 }
  0x8c   :  { %1939 = vmatpush1.bf16.msra.mxu0 %v2757_v47  ;;  %1776 = vmatprep.subr.bf16.mxu1 %v2762_v48 }
  0x8d   :  { %1940 = vmatprep.subr.bf16.mxu0 %v2765_v49 }
  0x8f   :  { %1777 = vmatpush1.bf16.msra.mxu1 %v2760_v50 }
  0x90   :  { %1941 = vmatpush1.bf16.msra.mxu0 %v2763_v51  ;;  %1778 = vmatprep.subr.bf16.mxu1 %v2768_v52 }
  0x91   :  { %1942 = vmatprep.subr.bf16.mxu0 %v2771_v53 }
  0x93   :  { %1779 = vmatpush1.bf16.msra.mxu1 %v2766_v54 }
  0x94   :  { %1943 = vmatpush1.bf16.msra.mxu0 %v2769_v55  ;;  %1780 = vmatprep.subr.bf16.mxu1 %v2774_v56 }
  0x95   :  { %1944 = vmatprep.subr.bf16.mxu0 %v2777_v57 }
  0x97   :  { %1781 = vmatpush1.bf16.msra.mxu1 %v2772_v58 }
  0x98   :  { %1945 = vmatpush1.bf16.msra.mxu0 %v2775_v59  ;;  %1782 = vmatprep.subr.bf16.mxu1 %v2780_v60 }
  0x99   :  { %1946 = vmatprep.subr.bf16.mxu0 %v2783_v61 }
  0x9b   :  { %1783 = vmatpush1.bf16.msra.mxu1 %v2778_v62 }
  0x9c   :  { %1947 = vmatpush1.bf16.msra.mxu0 %v2781_v63  ;;  %1784 = vmatprep.subr.bf16.mxu1 %v2786_v0 }
  0x9d   :  { %1948 = vmatprep.subr.bf16.mxu0 %v2789_v1 }
  0x9f   :  { %1785 = vmatpush1.bf16.msra.mxu1 %v2784_v2 }
  0xa0   :  { %1949 = vmatpush1.bf16.msra.mxu0 %v2787_v3  ;;  %1786 = vmatprep.subr.bf16.mxu1 %v2792_v4 }
  0xa1   :  { %1950 = vmatprep.subr.bf16.mxu0 %v2795_v5 }
  0xa3   :  { %1787 = vmatpush1.bf16.msra.mxu1 %v2790_v6 }
  0xa4   :  { %1951 = vmatpush1.bf16.msra.mxu0 %v2793_v7  ;;  %1788 = vmatprep.subr.bf16.mxu1 %v2798_v8 }
  0xa5   :  { %1952 = vmatprep.subr.bf16.mxu0 %v2801_v9 }
  0xa7   :  { %1789 = vmatpush1.bf16.msra.mxu1 %v2796_v10 }
  0xa8   :  { %1953 = vmatpush1.bf16.msra.mxu0 %v2799_v11  ;;  %1790 = vmatprep.subr.bf16.mxu1 %v2804_v12 }
  0xa9   :  { %1954 = vmatprep.subr.bf16.mxu0 %v2807_v13 }
  0xab   :  { %1791 = vmatpush1.bf16.msra.mxu1 %v2802_v14 }
  0xac   :  { %1955 = vmatpush1.bf16.msra.mxu0 %v2805_v15  ;;  %1792 = vmatprep.subr.bf16.mxu1 %v2810_v16 }
  0xad   :  { %1956 = vmatprep.subr.bf16.mxu0 %v2813_v17 }
  0xaf   :  { %1793 = vmatpush1.bf16.msra.mxu1 %v2808_v18 }
  0xb0   :  { %1957 = vmatpush1.bf16.msra.mxu0 %v2811_v19  ;;  %1794 = vmatprep.subr.bf16.mxu1 %v2816_v22 }
  0xb1   :  { %1958 = vmatprep.subr.bf16.mxu0 %v2819_v23 }
  0xb3   :  { %1795 = vmatpush1.bf16.msra.mxu1 %v2814_v24 }
  0xb4   :  { %1959 = vmatpush1.bf16.msra.mxu0 %v2817_v25  ;;  %1796 = vmatprep.subr.bf16.mxu1 %v2822_v26 }
  0xb5   :  { %1960 = vmatprep.subr.bf16.mxu0 %v2825_v27 }
  0xb7   :  { %1797 = vmatpush1.bf16.msra.mxu1 %v2820_v31 }
  0xb8   :  { %1961 = vmatpush1.bf16.msra.mxu0 %v2823_v32 }
  0xb9   :  { %10 = vsyncpa [#allocation3], 0  ;;  %1798 = vmatprep.subr.bf16.mxu1 %v2828_v34  ;;  %1962 = vmatprep.subr.bf16.mxu0 %v2831_v35  ;;  %v2834_v38 = vld [vmem:[%s3912_s1 + $0x2f4] ss:$8 sps:$4 sm:$0xff]   ;;  %v2832_v40 = vld [vmem:[%s3912_s1 + $0x2f0] ss:$8 sps:$4 sm:$0xff]   ;;  %v342_v47 = vcombine.high %v3251_v28, %v3251_v28  ;;  %v391_v48 = vcombine.high %v3254_v29, %v3254_v29 }
  0xba   :  { %v2837_v39 = vld [vmem:[%s3912_s1 + $0x6f4] ss:$8 sps:$4 sm:$0xff]   ;;  %v2835_v41 = vld [vmem:[%s3912_s1 + $0x6f0] ss:$8 sps:$4 sm:$0xff]   ;;  %v2840_v20 = vld [vmem:[%s3912_s1 + $0x304] ss:$8 sps:$4 sm:$0xff]  }
  0xbb   :  { %1799 = vmatpush1.bf16.msra.mxu1 %v2826_v36  ;;  %v2843_v21 = vld [vmem:[%s3912_s1 + $0x704] ss:$8 sps:$4 sm:$0xff]   ;;  %v2838_v43 = vld [vmem:[%s3912_s1 + $0x300] ss:$8 sps:$4 sm:$0xff]   ;;  %v2846_v45 = vld [vmem:[%s3912_s1 + $0x314] ss:$8 sps:$4 sm:$0xff]  }
  0xbc   :  { %1963 = vmatpush1.bf16.msra.mxu0 %v2829_v37  ;;  %1800 = vmatprep.subr.bf16.mxu1 %v2834_v38  ;;  %v2841_v44 = vld [vmem:[%s3912_s1 + $0x700] ss:$8 sps:$4 sm:$0xff]   ;;  %v2849_v46 = vld [vmem:[%s3912_s1 + $0x714] ss:$8 sps:$4 sm:$0xff]   ;;  %v2844_v49 = vld [vmem:[%s3912_s1 + $0x310] ss:$8 sps:$4 sm:$0xff]  }
  0xbd   :  { %1964 = vmatprep.subr.bf16.mxu0 %v2837_v39  ;;  %v2847_v50 = vld [vmem:[%s3912_s1 + $0x710] ss:$8 sps:$4 sm:$0xff]   ;;  %v2852_v28 = vld [vmem:[%s3912_s1 + $0x324] ss:$8 sps:$4 sm:$0xff]   ;;  %v2850_v51 = vld [vmem:[%s3912_s1 + $0x320] ss:$8 sps:$4 sm:$0xff]  }
  0xbe   :  { %v2855_v29 = vld [vmem:[%s3912_s1 + $0x724] ss:$8 sps:$4 sm:$0xff]   ;;  %v2853_v52 = vld [vmem:[%s3912_s1 + $0x720] ss:$8 sps:$4 sm:$0xff]   ;;  %v2858_v53 = vld [vmem:[%s3912_s1 + $0x334] ss:$8 sps:$4 sm:$0xff]  }
  0xbf   :  { %1801 = vmatpush1.bf16.msra.mxu1 %v2832_v40  ;;  %v2861_v54 = vld [vmem:[%s3912_s1 + $0x734] ss:$8 sps:$4 sm:$0xff]   ;;  %v2856_v55 = vld [vmem:[%s3912_s1 + $0x330] ss:$8 sps:$4 sm:$0xff]   ;;  %v2864_v57 = vld [vmem:[%s3912_s1 + $0x344] ss:$8 sps:$4 sm:$0xff]  }
  0xc0   :  { %1965 = vmatpush1.bf16.msra.mxu0 %v2835_v41  ;;  %1811 = vmatprep.subr.bf16.mxu1 %v2840_v20  ;;  %v2859_v56 = vld [vmem:[%s3912_s1 + $0x730] ss:$8 sps:$4 sm:$0xff]   ;;  %v2867_v58 = vld [vmem:[%s3912_s1 + $0x744] ss:$8 sps:$4 sm:$0xff]   ;;  %v2862_v59 = vld [vmem:[%s3912_s1 + $0x340] ss:$8 sps:$4 sm:$0xff]  }
  0xc1   :  { %1975 = vmatprep.subr.bf16.mxu0 %v2843_v21  ;;  %v2865_v60 = vld [vmem:[%s3912_s1 + $0x740] ss:$8 sps:$4 sm:$0xff]   ;;  %v2870_v61 = vld [vmem:[%s3912_s1 + $0x354] ss:$8 sps:$4 sm:$0xff]   ;;  %v2868_v63 = vld [vmem:[%s3912_s1 + $0x350] ss:$8 sps:$4 sm:$0xff]  }
  0xc2   :  { %1803 = vmatmul.mubr.bf16.vlgmr.msra.gmra.mrb[0].mxu1 %v3257_v30  ;;  %v2873_v62 = vld [vmem:[%s3912_s1 + $0x754] ss:$8 sps:$4 sm:$0xff]   ;;  %v2871_v0 = vld [vmem:[%s3912_s1 + $0x750] ss:$8 sps:$4 sm:$0xff]   ;;  %v2876_v1 = vld [vmem:[%s3912_s1 + $0x364] ss:$8 sps:$4 sm:$0xff]  }
  0xc3   :  { %1967 = vmatmul.mubr.bf16.vlgmr.msra.gmra.mrb[0].mxu0 %v3262_v33  ;;  %1812 = vmatpush1.bf16.msra.mxu1 %v2838_v43  ;;  %v2879_v2 = vld [vmem:[%s3912_s1 + $0x764] ss:$8 sps:$4 sm:$0xff]   ;;  %v2874_v3 = vld [vmem:[%s3912_s1 + $0x360] ss:$8 sps:$4 sm:$0xff]   ;;  %v2882_v5 = vld [vmem:[%s3912_s1 + $0x374] ss:$8 sps:$4 sm:$0xff]  }
  0xc4   :  { %1976 = vmatpush1.bf16.msra.mxu0 %v2841_v44  ;;  %1813 = vmatprep.subr.bf16.mxu1 %v2846_v45  ;;  %v2877_v4 = vld [vmem:[%s3912_s1 + $0x760] ss:$8 sps:$4 sm:$0xff]   ;;  %v2885_v6 = vld [vmem:[%s3912_s1 + $0x774] ss:$8 sps:$4 sm:$0xff]   ;;  %v2880_v7 = vld [vmem:[%s3912_s1 + $0x370] ss:$8 sps:$4 sm:$0xff]  }
  0xc5   :  { %1977 = vmatprep.subr.bf16.mxu0 %v2849_v46  ;;  %1843 = vmatprep.mubr.bf16.mxu1 %v342_v47  ;;  %v2883_v8 = vld [vmem:[%s3912_s1 + $0x770] ss:$8 sps:$4 sm:$0xff]   ;;  %v2888_v9 = vld [vmem:[%s3912_s1 + $0x384] ss:$8 sps:$4 sm:$0xff]   ;;  %v2886_v11 = vld [vmem:[%s3912_s1 + $0x380] ss:$8 sps:$4 sm:$0xff]   ;;  %v340_v47 = vcombine.high %v3257_v30, %v3257_v30 }
  0xc6   :  { %2007 = vmatprep.mubr.bf16.mxu0 %v391_v48  ;;  %v2891_v10 = vld [vmem:[%s3912_s1 + $0x784] ss:$8 sps:$4 sm:$0xff]   ;;  %v2889_v12 = vld [vmem:[%s3912_s1 + $0x780] ss:$8 sps:$4 sm:$0xff]   ;;  %v2894_v13 = vld [vmem:[%s3912_s1 + $0x394] ss:$8 sps:$4 sm:$0xff]   ;;  %v389_v48 = vcombine.high %v3262_v33, %v3262_v33 }
  0xc7   :  { %1814 = vmatpush1.bf16.msra.mxu1 %v2844_v49  ;;  %v2897_v14 = vld [vmem:[%s3912_s1 + $0x794] ss:$8 sps:$4 sm:$0xff]   ;;  %v2892_v15 = vld [vmem:[%s3912_s1 + $0x390] ss:$8 sps:$4 sm:$0xff]   ;;  %v2900_v17 = vld [vmem:[%s3912_s1 + $0x3a4] ss:$8 sps:$4 sm:$0xff]  }
  0xc8   :  { %1978 = vmatpush1.bf16.msra.mxu0 %v2847_v50  ;;  %1815 = vmatprep.subr.bf16.mxu1 %v2852_v28  ;;  %v2895_v16 = vld [vmem:[%s3912_s1 + $0x790] ss:$8 sps:$4 sm:$0xff]   ;;  %v2903_v18 = vld [vmem:[%s3912_s1 + $0x7a4] ss:$8 sps:$4 sm:$0xff]   ;;  %v2898_v19 = vld [vmem:[%s3912_s1 + $0x3a0] ss:$8 sps:$4 sm:$0xff]  }
  0xc9   :  { %1979 = vmatprep.subr.bf16.mxu0 %v2855_v29  ;;  %v2901_v22 = vld [vmem:[%s3912_s1 + $0x7a0] ss:$8 sps:$4 sm:$0xff]   ;;  %v2906_v23 = vld [vmem:[%s3912_s1 + $0x3b4] ss:$8 sps:$4 sm:$0xff]   ;;  %v2904_v25 = vld [vmem:[%s3912_s1 + $0x3b0] ss:$8 sps:$4 sm:$0xff]  }
  0xca   :  { %v2909_v24 = vld [vmem:[%s3912_s1 + $0x7b4] ss:$8 sps:$4 sm:$0xff]   ;;  %v2907_v26 = vld [vmem:[%s3912_s1 + $0x7b0] ss:$8 sps:$4 sm:$0xff]   ;;  %v2912_v27 = vld [vmem:[%s3912_s1 + $0x3c4] ss:$8 sps:$4 sm:$0xff]  }
  0xcb   :  { %1816 = vmatpush1.bf16.msra.mxu1 %v2850_v51  ;;  %v2915_v31 = vld [vmem:[%s3912_s1 + $0x7c4] ss:$8 sps:$4 sm:$0xff]   ;;  %v2910_v32 = vld [vmem:[%s3912_s1 + $0x3c0] ss:$8 sps:$4 sm:$0xff]   ;;  %v2918_v35 = vld [vmem:[%s3912_s1 + $0x3d4] ss:$8 sps:$4 sm:$0xff]  }
  0xcc   :  { %1980 = vmatpush1.bf16.msra.mxu0 %v2853_v52  ;;  %1817 = vmatprep.subr.bf16.mxu1 %v2858_v53  ;;  %v2913_v34 = vld [vmem:[%s3912_s1 + $0x7c0] ss:$8 sps:$4 sm:$0xff]   ;;  %v2921_v36 = vld [vmem:[%s3912_s1 + $0x7d4] ss:$8 sps:$4 sm:$0xff]   ;;  %v2916_v37 = vld [vmem:[%s3912_s1 + $0x3d0] ss:$8 sps:$4 sm:$0xff]  }
  0xcd   :  { %1981 = vmatprep.subr.bf16.mxu0 %v2861_v54  ;;  %v2919_v38 = vld [vmem:[%s3912_s1 + $0x7d0] ss:$8 sps:$4 sm:$0xff]   ;;  %v2924_v39 = vld [vmem:[%s3912_s1 + $0x3e4] ss:$8 sps:$4 sm:$0xff]   ;;  %v2922_v41 = vld [vmem:[%s3912_s1 + $0x3e0] ss:$8 sps:$4 sm:$0xff]  }
  0xce   :  { %v2927_v40 = vld [vmem:[%s3912_s1 + $0x7e4] ss:$8 sps:$4 sm:$0xff]   ;;  %v2925_v20 = vld [vmem:[%s3912_s1 + $0x7e0] ss:$8 sps:$4 sm:$0xff]   ;;  %v2930_v21 = vld [vmem:[%s3912_s1 + $0x3f4] ss:$8 sps:$4 sm:$0xff]  }
  0xcf   :  { %1818 = vmatpush1.bf16.msra.mxu1 %v2856_v55  ;;  %v2933_v43 = vld [vmem:[%s3912_s1 + $0x7f4] ss:$8 sps:$4 sm:$0xff]   ;;  %v2928_v44 = vld [vmem:[%s3912_s1 + $0x3f0] ss:$8 sps:$4 sm:$0xff]   ;;  %v2934_v46 = vld [vmem:[%s3914_s3 + $0x40] sm:$0xff]   ;;  %vm2195_vm0 = vcmask 74752  }
  0xd0   :  { %1982 = vmatpush1.bf16.msra.mxu0 %v2859_v56  ;;  %1819 = vmatprep.subr.bf16.mxu1 %v2864_v57  ;;  %v2931_v45 = vld [vmem:[%s3912_s1 + $0x7f0] ss:$8 sps:$4 sm:$0xff]   ;;  %v2935_v49 = vld [vmem:[%s3914_s3] sm:$0xff]   ;;  %v2936_v50 = vld [vmem:[%s3914_s3 + $0x48] sm:$0xff]  }
  0xd1   :  { %1983 = vmatprep.subr.bf16.mxu0 %v2867_v58  ;;  %v2937_v30 = vld [vmem:[%s3914_s3 + $0x8] sm:$0xff]   ;;  %v2938_v33 = vld [vmem:[%s3914_s3 + $0x50] sm:$0xff]   ;;  %v2940_v29 = vld [vmem:[%s3914_s3 + $0x58] sm:$0xff]  }
  0xd2   :  { %v2939_v28 = vld [vmem:[%s3914_s3 + $0x10] sm:$0xff]   ;;  %v2941_v51 = vld [vmem:[%s3914_s3 + $0x18] sm:$0xff]   ;;  %v2942_v52 = vld [vmem:[%s3914_s3 + $0x60] sm:$0xff]  }
  0xd3   :  { %1820 = vmatpush1.bf16.msra.mxu1 %v2862_v59  ;;  %v2943_v53 = vld [vmem:[%s3914_s3 + $0x20] sm:$0xff]   ;;  %v2944_v54 = vld [vmem:[%s3914_s3 + $0x68] sm:$0xff]   ;;  %v2946_v56 = vld [vmem:[%s3914_s3 + $0x70] sm:$0xff]  }
  0xd4   :  { %1984 = vmatpush1.bf16.msra.mxu0 %v2865_v60  ;;  %1821 = vmatprep.subr.bf16.mxu1 %v2870_v61  ;;  %v2945_v55 = vld [vmem:[%s3914_s3 + $0x28] sm:$0xff]   ;;  %v2947_v57 = vld [vmem:[%s3914_s3 + $0x30] sm:$0xff]   ;;  %v2948_v58 = vld [vmem:[%s3914_s3 + $0x78] sm:$0xff]   ;;  %v284_v60 = vsub.s32 0, %v3131_v42 }
  0xd5   :  { %1985 = vmatprep.subr.bf16.mxu0 %v2873_v62  ;;  %v2949_v59 = vld [vmem:[%s3914_s3 + $0x38] sm:$0xff]   ;;  %v280_v61 = vld [vmem:[%s3913_s2] sm:$0x3]  ;;  %v288_v62 = vsub.s32 1, %v3131_v42 }
  0xd7   :  { %1822 = vmatpush1.bf16.msra.mxu1 %v2868_v63  ;;  %v285_v63 = vrot.slane %v280_v61, %v284_v60 }
  0xd8   :  { %1986 = vmatpush1.bf16.msra.mxu0 %v2871_v0  ;;  %1823 = vmatprep.subr.bf16.mxu1 %v2876_v1  ;;  %v289_v0 = vrot.slane %v280_v61, %v288_v62 }
  0xd9   :  { %1987 = vmatprep.subr.bf16.mxu0 %v2879_v2 }
  0xdb   :  { %1824 = vmatpush1.bf16.msra.mxu1 %v2874_v3 }
  0xdc   :  { %1988 = vmatpush1.bf16.msra.mxu0 %v2877_v4  ;;  %1825 = vmatprep.subr.bf16.mxu1 %v2882_v5 }
  0xdd   :  { %1989 = vmatprep.subr.bf16.mxu0 %v2885_v6 }
  0xdf   :  { %1826 = vmatpush1.bf16.msra.mxu1 %v2880_v7 }
  0xe0   :  { %1990 = vmatpush1.bf16.msra.mxu0 %v2883_v8  ;;  %1827 = vmatprep.subr.bf16.mxu1 %v2888_v9 }
  0xe1   :  { %1991 = vmatprep.subr.bf16.mxu0 %v2891_v10 }
  0xe3   :  { %1828 = vmatpush1.bf16.msra.mxu1 %v2886_v11 }
  0xe4   :  { %1992 = vmatpush1.bf16.msra.mxu0 %v2889_v12  ;;  %1829 = vmatprep.subr.bf16.mxu1 %v2894_v13 }
  0xe5   :  { %1993 = vmatprep.subr.bf16.mxu0 %v2897_v14 }
  0xe7   :  { %1830 = vmatpush1.bf16.msra.mxu1 %v2892_v15 }
  0xe8   :  { %1994 = vmatpush1.bf16.msra.mxu0 %v2895_v16  ;;  %1831 = vmatprep.subr.bf16.mxu1 %v2900_v17 }
  0xe9   :  { %1995 = vmatprep.subr.bf16.mxu0 %v2903_v18  ;;  %v2479_v18 = vld [vmem:[%s3915_s4] ss:$0 sm:$0xff]  ;;  %s2983_s4 = smov [#allocation2]  }
  0xea   :  { %s2215_s23 = sshll.u32 %s2983_s4, 4  ;;  %s2216_s23 = int_to_ptr.vmem [resolvable:$true] %s2215_s23 }
  0xeb   :  { %1832 = vmatpush1.bf16.msra.mxu1 %v2898_v19  ;;  %s2958_s24 = scalar_lea.vmem %s2216_s23, 32  ;;  %p2963_p1 = scmp.lt.s32.totalorder %s2216_s23, %s2216_s23 }
  0xec   :  { %1996 = vmatpush1.bf16.msra.mxu0 %v2901_v22  ;;  %1833 = vmatprep.subr.bf16.mxu1 %v2906_v23  ;;  %p2959_p0 = scmp.ne.s32.totalorder %s2216_s23, %s2958_s24  ;;  %p2964_p2 = scmp.lt.s32.totalorder %s2958_s24, %s2958_s24 }
  0xed   :  { %1997 = vmatprep.subr.bf16.mxu0 %v2909_v24 }
  0xee   :  { %p2965_p3 = por %p2964_p2, %p2963_p1 }
  0xef   :  { %1834 = vmatpush1.bf16.msra.mxu1 %v2904_v25 }
  0xf0   :  { %1998 = vmatpush1.bf16.msra.mxu0 %v2907_v26  ;;  %1835 = vmatprep.subr.bf16.mxu1 %v2912_v27  ;;  %p2966_p4 = pnand %p2965_p3, %p2959_p0 }
  0xf1   :  { %1999 = vmatprep.subr.bf16.mxu0 %v2915_v31 }
  0xf3   :  { %1836 = vmatpush1.bf16.msra.mxu1 %v2910_v32 }
  0xf4   :  { %2000 = vmatpush1.bf16.msra.mxu0 %v2913_v34  ;;  %1837 = vmatprep.subr.bf16.mxu1 %v2918_v35 }
  0xf5   :  { %2001 = vmatprep.subr.bf16.mxu0 %v2921_v36 }
  0xf7   :  { %1838 = vmatpush1.bf16.msra.mxu1 %v2916_v37 }
  0xf8   :  { %2002 = vmatpush1.bf16.msra.mxu0 %v2919_v38  ;;  %1839 = vmatprep.subr.bf16.mxu1 %v2924_v39 }
  0xf9   :  { %2003 = vmatprep.subr.bf16.mxu0 %v2927_v40 }
  0xfb   :  { %1840 = vmatpush1.bf16.msra.mxu1 %v2922_v41 }
  0xfc   :  { %2004 = vmatpush1.bf16.msra.mxu0 %v2925_v20  ;;  %1841 = vmatprep.subr.bf16.mxu1 %v2930_v21 }
  0xfd   :  { %2005 = vmatprep.subr.bf16.mxu0 %v2933_v43 }
  0xff   :  { %1842 = vmatpush1.bf16.msra.mxu1 %v2928_v44 }
 0x100   :  { %2006 = vmatpush1.bf16.msra.mxu0 %v2931_v45  ;;  %2496 = vmatprep.subr.bf16.mxu1 %v2934_v46 }
 0x102   :  { %1844 = vmatmul.mubr.bf16.vlgmr.msra.gmra.mrb[0].mxu1 %v340_v47 }
 0x103   :  { %2008 = vmatmul.mubr.bf16.vlgmr.msra.gmra.mrb[0].mxu0 %v389_v48  ;;  %2497 = vmatpush3.bf16.msra.mxu1 %v2935_v49 }
 0x104   :  { %2498 = vmatprep.subr.bf16.mxu1 %v2936_v50 }
 0x107   :  { %2499 = vmatpush3.bf16.msra.mxu1 %v2937_v30 }
 0x108   :  { %2500 = vmatprep.subr.bf16.mxu1 %v2938_v33 }
 0x10b   :  { %2501 = vmatpush3.bf16.msra.mxu1 %v2939_v28 }
 0x10c   :  { %2502 = vmatprep.subr.bf16.mxu1 %v2940_v29 }
 0x10f   :  { %2503 = vmatpush3.bf16.msra.mxu1 %v2941_v51 }
 0x110   :  { %2504 = vmatprep.subr.bf16.mxu1 %v2942_v52 }
 0x113   :  { %2505 = vmatpush3.bf16.msra.mxu1 %v2943_v53 }
 0x114   :  { %2506 = vmatprep.subr.bf16.mxu1 %v2944_v54 }
 0x117   :  { %2507 = vmatpush3.bf16.msra.mxu1 %v2945_v55 }
 0x118   :  { %2508 = vmatprep.subr.bf16.mxu1 %v2946_v56 }
 0x11b   :  { %2509 = vmatpush3.bf16.msra.mxu1 %v2947_v57 }
 0x11c   :  { %2510 = vmatprep.subr.bf16.mxu1 %v2948_v58 }
 0x11f   :  { %2511 = vmatpush3.bf16.msra.mxu1 %v2949_v59 }
 0x1d5   :  { %v1845_v1 = vpop.f32.mrb[0].mxu1 }
 0x1d6   :  { %v2009_v2 = vpop.f32.mrb[0].mxu0  ;;  %v2518_v3 = vadd.f32 %v1845_v1, %v285_v63  ;;  %v1847_v4 = vpop.f32.mrb[1].mxu1 }
 0x1d7   :  { %v2011_v5 = vpop.f32.mrb[1].mxu0  ;;  %v2520_v6 = vadd.f32 %v1847_v4, %v289_v0  ;;  %v1849_v7 = vpop.f32.mrb[2].mxu1 }
 0x1d8   :  { %v2013_v8 = vpop.f32.mrb[2].mxu0  ;;  %v2519_v9 = vadd.f32 %v2518_v3, %v2009_v2  ;;  %v1850_v10 = vpop.f32.mrb[3].mxu1 }
 0x1d9   :  { %v2014_v11 = vpop.f32.mrb[3].mxu0  ;;  %v2521_v12 = vadd.f32 %v2520_v6, %v2011_v5 }
 0x1da   :  { %2950 = vtanh.f32 %v2519_v9 }
 0x1db   :  { %2952 = vtanh.f32 %v2521_v12 }
 0x1e4   :  { %v2951_v13 = vpop.eup %2950 }
 0x1e5   :  { %v2953_v14 = vpop.eup %2952  ;;  %v2018_v42 = vpack.c.bf16 %v2951_v13, %v2951_v13 }
 0x1e6   :  { %v2019_v15 = vpack.c.bf16 %v2953_v14, %v2953_v14 }
 0x1e8   :  { %2187 = vmatprep.mubr.bf16.mxu1 %v2019_v15 }
 0x1e9   :  { %2188 = vmatmul.mubr.bf16.vlgmr.msra.gmra.mrb[4].mxu1 %v2018_v42 }
 0x2bc   :  { %v2512_v16 = vpop.f32.mrb[4].mxu1 }
 0x2bd   :  { %v2513_v17 = vpop.f32.mrb[5].mxu1 }
 0x2be   :  { %v2514_v19 = vadd.f32 %v2513_v17, %v2512_v16  ;;  %v2515_v22 = vpop.f32.mrb[6].mxu1 }
 0x2bf   :  { %v2516_v23 = vpop.f32.mrb[7].mxu1 }
 0x2c0   :  { %v2190_v24 = vadd.f32 %v2514_v19, %v2479_v18 }
 0x2c2   :  { %v2196_v25 = vsel %vm2195_vm0, %v2190_v24, -inf }
 0x2c3   :  { %2197 = vmax.xlane.f32.xlu0 %v2196_v25 }
 0x350   :  { %v2198_v26 = vpop.xlane.xlu0 %2197 }
 0x351   :  { %v2199_v27 = vsub.f32 %v2190_v24, %v2198_v26 }
 0x353   :  { %v2200_v31 = vmul.f32 1.442695, %v2199_v27 }
 0x355   :  { %2954 = vpow2.f32 %v2200_v31 }
 0x35f   :  { %v2955_v32 = vpop.eup %2954 }
 0x360   :  { %v2202_v34 = vsel %vm2195_vm0, %v2955_v32, 0.0 }
 0x361   :  { %2203 = vadd.xlane.f32.xlu0 %v2202_v34 }
 0x3ee   :  { %v2204_v35 = vpop.xlane.xlu0 %2203 }
 0x3ef   :  { %2956 = vlog2.f32 %v2204_v35 }
 0x3f9   :  { %v2957_v36 = vpop.eup %2956 }
 0x3fa   :  { %v2206_v37 = vmul.f32 0.6931472, %v2957_v36 }
 0x3fc   :  { %v2207_v38 = vsub.f32 %v2199_v27, %v2206_v37 }
 0x3fe   :  { %2208 = vst.msk [vmem:[#allocation2] sm:$0x3] %vm2195_vm0, %v2207_v38 }
 0x3ff   :  { %2969 = shalt.err (!%p2966_p4)
}
 0x400   :  { %s2970_s27 = scalar_lea.hbm %s3916_s5, 32 }
 0x401   :  { %p2971_p5 = scmp.ne.s32.totalorder %s3916_s5, %s2970_s27  ;;  %p2974_p6 = scmp.lt.u32.totalorder %s2970_s27, %s3916_s5 }
 0x403   :  { %p2976_p7 = pnand %p2974_p6, %p2971_p5 }
 0x405   :  { %2979 = shalt.err (!%p2976_p7)
}
 0x406   :  { %2218 = dma.vmem_to_hbm [thread:$0]  %s2216_s23, 32, %s3916_s5, [#allocation3]  }
 0x407   :  { %2980 = dma.done.wait [#allocation3], 32  }
 0x408   :  { %2981 = vsyncadd [#allocation3], 4294967264 }
 0x409   :  { %2222 = vsyncpa [#allocation3], 1 }

</bundles_post_ra>
